<compile_context>
chip_gen: v7x
topology: tpu7x:2x2x1
jax: 0.10.0
libtpu: 0.0.40
codegen_flags: <defaults>
</compile_context>

<pallas_src>
import jax
import jax.numpy as jnp
from jax.experimental import pallas as pl
from jax.experimental.pallas import tpu as pltpu


def _layernorm(x, gamma, beta, eps=1e-5):
    mu = jnp.mean(x, axis=-1, keepdims=True)
    xc = x - mu
    var = jnp.mean(xc * xc, axis=-1, keepdims=True)
    inv = jax.lax.rsqrt(var + eps)
    return xc * inv * gamma + beta


def _portfolio_kernel(x_ref, wcat_ref, vcat_ref, fc1w_ref, fc2w_ref,
                      vec_ref, lamt_ref, o_ref):
    """All K transformer blocks in one invocation; weights fully VMEM-resident."""
    X = x_ref[...].astype(jnp.float32)            # (N, D)
    N, D = X.shape
    K = wcat_ref.shape[0]
    HD = wcat_ref.shape[-1]
    H = HD // D
    dF = fc1w_ref.shape[-1]
    scale = 1.0 / (float(D) ** 0.5)

    for k in range(K):                            # static -> fully unrolled
        Wc = wcat_ref[k]                          # (D, H*D)
        Vc = vcat_ref[k]                          # (H*D, D)
        slab = vec_ref[k]                         # (8, C) packed vectors
        fc1_b = slab[0:1, :dF]
        fc2_b = slab[1:2, :D]
        g1 = slab[2:3, :D]
        b1 = slab[3:4, :D]
        g2 = slab[4:5, :D]
        b2 = slab[5:6, :D]

        # -------- multi-head attention (heads lane-batched on the input side) --
        # Fold 1/sqrt(D) into the (N, H*D) intermediate (cheaper than scaling (N,N)).
        xw_all = jnp.dot(X, Wc, preferred_element_type=jnp.float32) * scale
        # Analytic form of the "+ 1e-8" on the attention weights:
        #   (softmax + 1e-8) @ X == softmax @ X + 1e-8 * colsum(X)
        colsum = 1e-8 * jnp.sum(X, axis=0, keepdims=True)        # (1, D)

        attn = jnp.zeros((N, D), jnp.float32)
        for h in range(H):                        # static (H is small)
            xw_h = xw_all[:, h * D:(h + 1) * D]   # (N, D) lane slice
            # scores_h = xw_h @ X^T without materializing the transpose of X.
            scores = jax.lax.dot_general(
                xw_h, X, dimension_numbers=(((1,), (1,)), ((), ())),
                preferred_element_type=jnp.float32)               # (N, N)
            m = jnp.max(scores, axis=1, keepdims=True)
            e = jnp.exp(scores - m)
            denom = jnp.sum(e, axis=1, keepdims=True)
            wx = jnp.dot(e, X, preferred_element_type=jnp.float32)  # (N, D)
            # Normalize after the value-side matmul; approx reciprocal rides the
            # otherwise-idle EUP slot (error ~2^-12, far within tolerance).
            wx = wx * pl.reciprocal(denom, approx=True) + colsum
            # Per-head accumulation (no lane-axis concatenate / relayout).
            attn = attn + jnp.dot(wx, Vc[h * D:(h + 1) * D, :],
                                  preferred_element_type=jnp.float32)

        # -------- norm1(X + attn) ----------------------------------------------
        y = _layernorm(X + attn, g1, b1)

        # -------- feed-forward --------------------------------------------------
        # TODO(synk): nn.Dropout(p=0.1) is identity in eval mode; training-mode
        # RNG masking is not ported.
        h1 = jnp.maximum(
            jnp.dot(y, fc1w_ref[k], preferred_element_type=jnp.float32) + fc1_b,
            0.0)
        ff = jnp.dot(h1, fc2w_ref[k], preferred_element_type=jnp.float32) + fc2_b

        # -------- norm2(y + ffn) ------------------------------------------------
        X = _layernorm(y + ff, g2, b2)

    # -------- final projection, lane-dense (1, N) output -----------------------
    # out = lambda^T @ X^T, computed as an NT contraction over D.
    o_ref[...] = jax.lax.dot_general(
        lamt_ref[...], X, dimension_numbers=(((1,), (1,)), ((), ())),
        preferred_element_type=jnp.float32).astype(o_ref.dtype)


def nonlinear_portfolio_forward(X, W, V, fc1_w, fc1_b, fc2_w, fc2_b,
                                g1, b1, g2, b2, lam):
    """X: (N, D); W, V: (K, H, D, D); fc1_w: (K, D, dF); fc1_b: (K, dF);
    fc2_w: (K, dF, D); fc2_b: (K, D); g*/b*: (K, D); lam: (D, 1). Returns (N,)."""
    N, D = X.shape
    K, H = W.shape[0], W.shape[1]
    dF = fc1_w.shape[-1]

    # Layout plumbing stays in the wrapper:
    #   W_cat[k][:, h*D:(h+1)*D] = W[k, h]  ->  X @ W_cat computes all heads at once
    #   V_cat[k][h*D:(h+1)*D, :] = V[k, h]  ->  per-head row slices for accumulation
    W_cat = jnp.transpose(W, (0, 2, 1, 3)).reshape(K, D, H * D)
    V_cat = V.reshape(K, H * D, D)

    # Pack the six tiny per-block vectors into one (K, 8, C) slab: one DMA, one
    # VMEM tile, sliced inside the kernel.
    C = max(dF, D, 128)
    vec_slab = jnp.zeros((K, 8, C), jnp.float32)
    vec_slab = vec_slab.at[:, 0, :dF].set(fc1_b.astype(jnp.float32))
    vec_slab = vec_slab.at[:, 1, :D].set(fc2_b.astype(jnp.float32))
    vec_slab = vec_slab.at[:, 2, :D].set(g1.astype(jnp.float32))
    vec_slab = vec_slab.at[:, 3, :D].set(b1.astype(jnp.float32))
    vec_slab = vec_slab.at[:, 4, :D].set(g2.astype(jnp.float32))
    vec_slab = vec_slab.at[:, 5, :D].set(b2.astype(jnp.float32))

    lam_t = lam.reshape(D, 1).T                   # (1, D), lane-dense

    vmem = pl.BlockSpec(memory_space=pltpu.MemorySpace.VMEM)
    out = pl.pallas_call(
        _portfolio_kernel,
        out_shape=jax.ShapeDtypeStruct((1, N), X.dtype),
        in_specs=[vmem] * 7,
        out_specs=vmem,
    )(X, W_cat, V_cat, fc1_w, fc2_w, vec_slab, lam_t)
    return out[0, :]


def nonlinear_portfolio_forward_ref(X, W, V, fc1_w, fc1_b, fc2_w, fc2_b,
                                    g1, b1, g2, b2, lam):
    """Pure-JAX reference mirroring the PyTorch forward (eval mode)."""
    D = X.shape[1]
    K, H = W.shape[0], W.shape[1]

    def ln(x, g, b, eps=1e-5):
        mu = jnp.mean(x, axis=-1, keepdims=True)
        var = jnp.mean((x - mu) ** 2, axis=-1, keepdims=True)
        return (x - mu) / jnp.sqrt(var + eps) * g + b

    for k in range(K):
        attn = jnp.zeros_like(X)
        for h in range(H):
            scores = X @ W[k, h] @ X.T / (D ** 0.5)
            weights = jax.nn.softmax(scores, axis=1) + 1e-8
            attn = attn + weights @ X @ V[k, h]
        X = ln(X + attn, g1[k], b1[k])
        ffn = jnp.maximum(X @ fc1_w[k] + fc1_b[k], 0.0) @ fc2_w[k] + fc2_b[k]
        X = ln(X + ffn, g2[k], b2[k])
    return (X @ lam)[:, 0]


if __name__ == "__main__":
    # Small shapes consistent with the module: N stocks, D features, K blocks.
    N, D, H, K, dF = 16, 32, 1, 3, 128

    key = jax.random.PRNGKey(0)
    ks = jax.random.split(key, 12)
    X = jax.random.normal(ks[0], (N, D), dtype=jnp.float32)
    W = jax.random.normal(ks[1], (K, H, D, D), dtype=jnp.float32) / 100.0
    V = jax.random.normal(ks[2], (K, H, D, D), dtype=jnp.float32) / 100.0
    fc1_w = jax.random.normal(ks[3], (K, D, dF), dtype=jnp.float32) * 0.05
    fc1_b = jax.random.normal(ks[4], (K, dF), dtype=jnp.float32) * 0.05
    fc2_w = jax.random.normal(ks[5], (K, dF, D), dtype=jnp.float32) * 0.05
    fc2_b = jax.random.normal(ks[6], (K, D), dtype=jnp.float32) * 0.05
    g1 = 1.0 + 0.1 * jax.random.normal(ks[7], (K, D), dtype=jnp.float32)
    b1 = 0.05 * jax.random.normal(ks[8], (K, D), dtype=jnp.float32)
    g2 = 1.0 + 0.1 * jax.random.normal(ks[9], (K, D), dtype=jnp.float32)
    b2 = 0.05 * jax.random.normal(ks[10], (K, D), dtype=jnp.float32)
    lam = jax.random.normal(ks[11], (D, 1), dtype=jnp.float32) / 1000.0

    out = nonlinear_portfolio_forward(X, W, V, fc1_w, fc1_b, fc2_w, fc2_b,
                                      g1, b1, g2, b2, lam)
    out = jax.block_until_ready(out)
    assert out.shape == (N,)

    ref = nonlinear_portfolio_forward_ref(X, W, V, fc1_w, fc1_b, fc2_w, fc2_b,
                                          g1, b1, g2, b2, lam)
    # Tolerance accounts for the (algebraically identical) softmax re-association,
    # matmul-ordering differences, and the ~2^-12 error of the EUP approximate
    # reciprocal (propagated error at the output is <<1e-5 at these scales).
    assert jnp.allclose(out, ref, atol=1e-4, rtol=1e-3), "mismatch vs reference"

    print("KERNEL_OK")
</pallas_src>

<mosaic_0001>
module attributes {stable_mosaic.version = 11 : i64} {
  func.func @_portfolio_kernel(%arg0: memref<16x32xf32, #tpu.memory_space<vmem>>, %arg1: memref<3x32x32xf32, #tpu.memory_space<vmem>>, %arg2: memref<3x32x32xf32, #tpu.memory_space<vmem>>, %arg3: memref<3x32x128xf32, #tpu.memory_space<vmem>>, %arg4: memref<3x128x32xf32, #tpu.memory_space<vmem>>, %arg5: memref<3x8x128xf32, #tpu.memory_space<vmem>>, %arg6: memref<1x32xf32, #tpu.memory_space<vmem>>, %arg7: memref<1x16xf32, #tpu.memory_space<vmem>>) attributes {dimension_semantics = [], scalar_prefetch = 0 : i64, scratch_operands = 0 : i64, tpu.core_type = #tpu.core_type<tc>} {
    %c0 = arith.constant 0 : index
    %c0_0 = arith.constant 0 : index
    %0 = vector.load %arg0[%c0, %c0_0] : memref<16x32xf32, #tpu.memory_space<vmem>>, vector<16x32xf32>
    %c0_1 = arith.constant 0 : index
    %c0_2 = arith.constant 0 : index
    %c0_3 = arith.constant 0 : index
    %1 = vector.load %arg1[%c0_1, %c0_2, %c0_3] : memref<3x32x32xf32, #tpu.memory_space<vmem>>, vector<1x32x32xf32>
    %2 = vector.shape_cast %1 : vector<1x32x32xf32> to vector<32x32xf32>
    %c0_4 = arith.constant 0 : index
    %c0_5 = arith.constant 0 : index
    %c0_6 = arith.constant 0 : index
    %3 = vector.load %arg2[%c0_4, %c0_5, %c0_6] : memref<3x32x32xf32, #tpu.memory_space<vmem>>, vector<1x32x32xf32>
    %4 = vector.shape_cast %3 : vector<1x32x32xf32> to vector<32x32xf32>
    %c0_7 = arith.constant 0 : index
    %c0_8 = arith.constant 0 : index
    %c0_9 = arith.constant 0 : index
    %5 = vector.load %arg5[%c0_7, %c0_8, %c0_9] : memref<3x8x128xf32, #tpu.memory_space<vmem>>, vector<1x8x128xf32>
    %6 = vector.shape_cast %5 : vector<1x8x128xf32> to vector<8x128xf32>
    %7 = vector.extract_strided_slice %6 {offsets = [0, 0], sizes = [1, 128], strides = [1, 1]} : vector<8x128xf32> to vector<1x128xf32>
    %8 = vector.extract_strided_slice %6 {offsets = [1, 0], sizes = [1, 32], strides = [1, 1]} : vector<8x128xf32> to vector<1x32xf32>
    %9 = vector.extract_strided_slice %6 {offsets = [2, 0], sizes = [1, 32], strides = [1, 1]} : vector<8x128xf32> to vector<1x32xf32>
    %10 = vector.extract_strided_slice %6 {offsets = [3, 0], sizes = [1, 32], strides = [1, 1]} : vector<8x128xf32> to vector<1x32xf32>
    %11 = vector.extract_strided_slice %6 {offsets = [4, 0], sizes = [1, 32], strides = [1, 1]} : vector<8x128xf32> to vector<1x32xf32>
    %12 = vector.extract_strided_slice %6 {offsets = [5, 0], sizes = [1, 32], strides = [1, 1]} : vector<8x128xf32> to vector<1x32xf32>
    %cst = arith.constant dense<0.000000e+00> : vector<16x32xf32>
    %13 = tpu.matmul %0, %2, %cst {dimension_numbers = #tpu.dot_dimension_numbers<[1], [0], [0], [1], [0, 0, 1, 1], [], []>} : vector<16x32xf32>, vector<32x32xf32>, vector<16x32xf32> -> vector<16x32xf32>
    %cst_10 = arith.constant 0.176776692 : f32
    %14 = vector.broadcast %cst_10 : f32 to vector<16x32xf32>
    %15 = arith.mulf %13, %14 : vector<16x32xf32>
    %cst_11 = arith.constant dense<0.000000e+00> : vector<32xf32>
    %16 = vector.multi_reduction <add>, %0, %cst_11 [0] : vector<16x32xf32> to vector<32xf32>
    %17 = vector.shape_cast %16 : vector<32xf32> to vector<1x32xf32>
    %cst_12 = arith.constant 9.99999993E-9 : f32
    %18 = vector.broadcast %cst_12 : f32 to vector<1x32xf32>
    %19 = arith.mulf %18, %17 : vector<1x32xf32>
    %cst_13 = arith.constant 0.000000e+00 : f32
    %20 = vector.broadcast %cst_13 : f32 to vector<16x32xf32>
    %cst_14 = arith.constant dense<0.000000e+00> : vector<16x16xf32>
    %21 = tpu.matmul %15, %0, %cst_14 {dimension_numbers = #tpu.dot_dimension_numbers<[1], [1], [0], [0], [0, 0, 1, 0], [], []>} : vector<16x32xf32>, vector<16x32xf32>, vector<16x16xf32> -> vector<16x16xf32>
    %cst_15 = arith.constant dense<0xFF800000> : vector<16xf32>
    %22 = vector.multi_reduction <maximumf>, %21, %cst_15 [1] : vector<16x16xf32> to vector<16xf32>
    %23 = vector.shape_cast %22 : vector<16xf32> to vector<16x1xf32>
    %24 = vector.broadcast %23 : vector<16x1xf32> to vector<16x16xf32>
    %25 = arith.subf %21, %24 : vector<16x16xf32>
    %26 = math.exp %25 : vector<16x16xf32>
    %cst_16 = arith.constant dense<0.000000e+00> : vector<16xf32>
    %27 = vector.multi_reduction <add>, %26, %cst_16 [1] : vector<16x16xf32> to vector<16xf32>
    %28 = vector.shape_cast %27 : vector<16xf32> to vector<16x1xf32>
    %cst_17 = arith.constant dense<0.000000e+00> : vector<16x32xf32>
    %29 = tpu.matmul %26, %0, %cst_17 {dimension_numbers = #tpu.dot_dimension_numbers<[1], [0], [0], [1], [0, 0, 1, 1], [], []>} : vector<16x16xf32>, vector<16x32xf32>, vector<16x32xf32> -> vector<16x32xf32>
    %30 = tpu.reciprocal %28 {approx = true} : vector<16x1xf32> -> vector<16x1xf32>
    %31 = vector.broadcast %30 : vector<16x1xf32> to vector<16x32xf32>
    %32 = arith.mulf %29, %31 : vector<16x32xf32>
    %33 = vector.broadcast %19 : vector<1x32xf32> to vector<16x32xf32>
    %34 = arith.addf %32, %33 : vector<16x32xf32>
    %cst_18 = arith.constant dense<0.000000e+00> : vector<16x32xf32>
    %35 = tpu.matmul %34, %4, %cst_18 {dimension_numbers = #tpu.dot_dimension_numbers<[1], [0], [0], [1], [0, 0, 1, 1], [], []>} : vector<16x32xf32>, vector<32x32xf32>, vector<16x32xf32> -> vector<16x32xf32>
    %36 = arith.addf %20, %35 : vector<16x32xf32>
    %37 = arith.addf %0, %36 : vector<16x32xf32>
    %cst_19 = arith.constant dense<0.000000e+00> : vector<16xf32>
    %38 = vector.multi_reduction <add>, %37, %cst_19 [1] : vector<16x32xf32> to vector<16xf32>
    %39 = vector.shape_cast %38 : vector<16xf32> to vector<16x1xf32>
    %cst_20 = arith.constant 3.200000e+01 : f32
    %40 = vector.broadcast %cst_20 : f32 to vector<16x1xf32>
    %41 = arith.divf %39, %40 : vector<16x1xf32>
    %42 = vector.broadcast %41 : vector<16x1xf32> to vector<16x32xf32>
    %43 = arith.subf %37, %42 : vector<16x32xf32>
    %44 = arith.mulf %43, %43 : vector<16x32xf32>
    %cst_21 = arith.constant dense<0.000000e+00> : vector<16xf32>
    %45 = vector.multi_reduction <add>, %44, %cst_21 [1] : vector<16x32xf32> to vector<16xf32>
    %46 = vector.shape_cast %45 : vector<16xf32> to vector<16x1xf32>
    %cst_22 = arith.constant 3.200000e+01 : f32
    %47 = vector.broadcast %cst_22 : f32 to vector<16x1xf32>
    %48 = arith.divf %46, %47 : vector<16x1xf32>
    %cst_23 = arith.constant 9.99999974E-6 : f32
    %49 = vector.broadcast %cst_23 : f32 to vector<16x1xf32>
    %50 = arith.addf %48, %49 : vector<16x1xf32>
    %51 = math.rsqrt %50 : vector<16x1xf32>
    %52 = vector.broadcast %51 : vector<16x1xf32> to vector<16x32xf32>
    %53 = arith.mulf %43, %52 : vector<16x32xf32>
    %54 = vector.broadcast %9 : vector<1x32xf32> to vector<16x32xf32>
    %55 = arith.mulf %53, %54 : vector<16x32xf32>
    %56 = vector.broadcast %10 : vector<1x32xf32> to vector<16x32xf32>
    %57 = arith.addf %55, %56 : vector<16x32xf32>
    %c0_24 = arith.constant 0 : index
    %c0_25 = arith.constant 0 : index
    %c0_26 = arith.constant 0 : index
    %58 = vector.load %arg3[%c0_24, %c0_25, %c0_26] : memref<3x32x128xf32, #tpu.memory_space<vmem>>, vector<1x32x128xf32>
    %59 = vector.shape_cast %58 : vector<1x32x128xf32> to vector<32x128xf32>
    %cst_27 = arith.constant dense<0.000000e+00> : vector<16x128xf32>
    %60 = tpu.matmul %57, %59, %cst_27 {dimension_numbers = #tpu.dot_dimension_numbers<[1], [0], [0], [1], [0, 0, 1, 1], [], []>} : vector<16x32xf32>, vector<32x128xf32>, vector<16x128xf32> -> vector<16x128xf32>
    %61 = vector.broadcast %7 : vector<1x128xf32> to vector<16x128xf32>
    %62 = arith.addf %60, %61 : vector<16x128xf32>
    %cst_28 = arith.constant 0.000000e+00 : f32
    %63 = vector.broadcast %cst_28 : f32 to vector<16x128xf32>
    %64 = arith.maximumf %62, %63 : vector<16x128xf32>
    %c0_29 = arith.constant 0 : index
    %c0_30 = arith.constant 0 : index
    %c0_31 = arith.constant 0 : index
    %65 = vector.load %arg4[%c0_29, %c0_30, %c0_31] : memref<3x128x32xf32, #tpu.memory_space<vmem>>, vector<1x128x32xf32>
    %66 = vector.shape_cast %65 : vector<1x128x32xf32> to vector<128x32xf32>
    %cst_32 = arith.constant dense<0.000000e+00> : vector<16x32xf32>
    %67 = tpu.matmul %64, %66, %cst_32 {dimension_numbers = #tpu.dot_dimension_numbers<[1], [0], [0], [1], [0, 0, 1, 1], [], []>} : vector<16x128xf32>, vector<128x32xf32>, vector<16x32xf32> -> vector<16x32xf32>
    %68 = vector.broadcast %8 : vector<1x32xf32> to vector<16x32xf32>
    %69 = arith.addf %67, %68 : vector<16x32xf32>
    %70 = arith.addf %57, %69 : vector<16x32xf32>
    %cst_33 = arith.constant dense<0.000000e+00> : vector<16xf32>
    %71 = vector.multi_reduction <add>, %70, %cst_33 [1] : vector<16x32xf32> to vector<16xf32>
    %72 = vector.shape_cast %71 : vector<16xf32> to vector<16x1xf32>
    %cst_34 = arith.constant 3.200000e+01 : f32
    %73 = vector.broadcast %cst_34 : f32 to vector<16x1xf32>
    %74 = arith.divf %72, %73 : vector<16x1xf32>
    %75 = vector.broadcast %74 : vector<16x1xf32> to vector<16x32xf32>
    %76 = arith.subf %70, %75 : vector<16x32xf32>
    %77 = arith.mulf %76, %76 : vector<16x32xf32>
    %cst_35 = arith.constant dense<0.000000e+00> : vector<16xf32>
    %78 = vector.multi_reduction <add>, %77, %cst_35 [1] : vector<16x32xf32> to vector<16xf32>
    %79 = vector.shape_cast %78 : vector<16xf32> to vector<16x1xf32>
    %cst_36 = arith.constant 3.200000e+01 : f32
    %80 = vector.broadcast %cst_36 : f32 to vector<16x1xf32>
    %81 = arith.divf %79, %80 : vector<16x1xf32>
    %cst_37 = arith.constant 9.99999974E-6 : f32
    %82 = vector.broadcast %cst_37 : f32 to vector<16x1xf32>
    %83 = arith.addf %81, %82 : vector<16x1xf32>
    %84 = math.rsqrt %83 : vector<16x1xf32>
    %85 = vector.broadcast %84 : vector<16x1xf32> to vector<16x32xf32>
    %86 = arith.mulf %76, %85 : vector<16x32xf32>
    %87 = vector.broadcast %11 : vector<1x32xf32> to vector<16x32xf32>
    %88 = arith.mulf %86, %87 : vector<16x32xf32>
    %89 = vector.broadcast %12 : vector<1x32xf32> to vector<16x32xf32>
    %90 = arith.addf %88, %89 : vector<16x32xf32>
    %c1 = arith.constant 1 : index
    %c0_38 = arith.constant 0 : index
    %c0_39 = arith.constant 0 : index
    %91 = vector.load %arg1[%c1, %c0_38, %c0_39] : memref<3x32x32xf32, #tpu.memory_space<vmem>>, vector<1x32x32xf32>
    %92 = vector.shape_cast %91 : vector<1x32x32xf32> to vector<32x32xf32>
    %c1_40 = arith.constant 1 : index
    %c0_41 = arith.constant 0 : index
    %c0_42 = arith.constant 0 : index
    %93 = vector.load %arg2[%c1_40, %c0_41, %c0_42] : memref<3x32x32xf32, #tpu.memory_space<vmem>>, vector<1x32x32xf32>
    %94 = vector.shape_cast %93 : vector<1x32x32xf32> to vector<32x32xf32>
    %c1_43 = arith.constant 1 : index
    %c0_44 = arith.constant 0 : index
    %c0_45 = arith.constant 0 : index
    %95 = vector.load %arg5[%c1_43, %c0_44, %c0_45] : memref<3x8x128xf32, #tpu.memory_space<vmem>>, vector<1x8x128xf32>
    %96 = vector.shape_cast %95 : vector<1x8x128xf32> to vector<8x128xf32>
    %97 = vector.extract_strided_slice %96 {offsets = [0, 0], sizes = [1, 128], strides = [1, 1]} : vector<8x128xf32> to vector<1x128xf32>
    %98 = vector.extract_strided_slice %96 {offsets = [1, 0], sizes = [1, 32], strides = [1, 1]} : vector<8x128xf32> to vector<1x32xf32>
    %99 = vector.extract_strided_slice %96 {offsets = [2, 0], sizes = [1, 32], strides = [1, 1]} : vector<8x128xf32> to vector<1x32xf32>
    %100 = vector.extract_strided_slice %96 {offsets = [3, 0], sizes = [1, 32], strides = [1, 1]} : vector<8x128xf32> to vector<1x32xf32>
    %101 = vector.extract_strided_slice %96 {offsets = [4, 0], sizes = [1, 32], strides = [1, 1]} : vector<8x128xf32> to vector<1x32xf32>
    %102 = vector.extract_strided_slice %96 {offsets = [5, 0], sizes = [1, 32], strides = [1, 1]} : vector<8x128xf32> to vector<1x32xf32>
    %cst_46 = arith.constant dense<0.000000e+00> : vector<16x32xf32>
    %103 = tpu.matmul %90, %92, %cst_46 {dimension_numbers = #tpu.dot_dimension_numbers<[1], [0], [0], [1], [0, 0, 1, 1], [], []>} : vector<16x32xf32>, vector<32x32xf32>, vector<16x32xf32> -> vector<16x32xf32>
    %cst_47 = arith.constant 0.176776692 : f32
    %104 = vector.broadcast %cst_47 : f32 to vector<16x32xf32>
    %105 = arith.mulf %103, %104 : vector<16x32xf32>
    %cst_48 = arith.constant dense<0.000000e+00> : vector<32xf32>
    %106 = vector.multi_reduction <add>, %90, %cst_48 [0] : vector<16x32xf32> to vector<32xf32>
    %107 = vector.shape_cast %106 : vector<32xf32> to vector<1x32xf32>
    %cst_49 = arith.constant 9.99999993E-9 : f32
    %108 = vector.broadcast %cst_49 : f32 to vector<1x32xf32>
    %109 = arith.mulf %108, %107 : vector<1x32xf32>
    %cst_50 = arith.constant 0.000000e+00 : f32
    %110 = vector.broadcast %cst_50 : f32 to vector<16x32xf32>
    %cst_51 = arith.constant dense<0.000000e+00> : vector<16x16xf32>
    %111 = tpu.matmul %105, %90, %cst_51 {dimension_numbers = #tpu.dot_dimension_numbers<[1], [1], [0], [0], [0, 0, 1, 0], [], []>} : vector<16x32xf32>, vector<16x32xf32>, vector<16x16xf32> -> vector<16x16xf32>
    %cst_52 = arith.constant dense<0xFF800000> : vector<16xf32>
    %112 = vector.multi_reduction <maximumf>, %111, %cst_52 [1] : vector<16x16xf32> to vector<16xf32>
    %113 = vector.shape_cast %112 : vector<16xf32> to vector<16x1xf32>
    %114 = vector.broadcast %113 : vector<16x1xf32> to vector<16x16xf32>
    %115 = arith.subf %111, %114 : vector<16x16xf32>
    %116 = math.exp %115 : vector<16x16xf32>
    %cst_53 = arith.constant dense<0.000000e+00> : vector<16xf32>
    %117 = vector.multi_reduction <add>, %116, %cst_53 [1] : vector<16x16xf32> to vector<16xf32>
    %118 = vector.shape_cast %117 : vector<16xf32> to vector<16x1xf32>
    %cst_54 = arith.constant dense<0.000000e+00> : vector<16x32xf32>
    %119 = tpu.matmul %116, %90, %cst_54 {dimension_numbers = #tpu.dot_dimension_numbers<[1], [0], [0], [1], [0, 0, 1, 1], [], []>} : vector<16x16xf32>, vector<16x32xf32>, vector<16x32xf32> -> vector<16x32xf32>
    %120 = tpu.reciprocal %118 {approx = true} : vector<16x1xf32> -> vector<16x1xf32>
    %121 = vector.broadcast %120 : vector<16x1xf32> to vector<16x32xf32>
    %122 = arith.mulf %119, %121 : vector<16x32xf32>
    %123 = vector.broadcast %109 : vector<1x32xf32> to vector<16x32xf32>
    %124 = arith.addf %122, %123 : vector<16x32xf32>
    %cst_55 = arith.constant dense<0.000000e+00> : vector<16x32xf32>
    %125 = tpu.matmul %124, %94, %cst_55 {dimension_numbers = #tpu.dot_dimension_numbers<[1], [0], [0], [1], [0, 0, 1, 1], [], []>} : vector<16x32xf32>, vector<32x32xf32>, vector<16x32xf32> -> vector<16x32xf32>
    %126 = arith.addf %110, %125 : vector<16x32xf32>
    %127 = arith.addf %90, %126 : vector<16x32xf32>
    %cst_56 = arith.constant dense<0.000000e+00> : vector<16xf32>
    %128 = vector.multi_reduction <add>, %127, %cst_56 [1] : vector<16x32xf32> to vector<16xf32>
    %129 = vector.shape_cast %128 : vector<16xf32> to vector<16x1xf32>
    %cst_57 = arith.constant 3.200000e+01 : f32
    %130 = vector.broadcast %cst_57 : f32 to vector<16x1xf32>
    %131 = arith.divf %129, %130 : vector<16x1xf32>
    %132 = vector.broadcast %131 : vector<16x1xf32> to vector<16x32xf32>
    %133 = arith.subf %127, %132 : vector<16x32xf32>
    %134 = arith.mulf %133, %133 : vector<16x32xf32>
    %cst_58 = arith.constant dense<0.000000e+00> : vector<16xf32>
    %135 = vector.multi_reduction <add>, %134, %cst_58 [1] : vector<16x32xf32> to vector<16xf32>
    %136 = vector.shape_cast %135 : vector<16xf32> to vector<16x1xf32>
    %cst_59 = arith.constant 3.200000e+01 : f32
    %137 = vector.broadcast %cst_59 : f32 to vector<16x1xf32>
    %138 = arith.divf %136, %137 : vector<16x1xf32>
    %cst_60 = arith.constant 9.99999974E-6 : f32
    %139 = vector.broadcast %cst_60 : f32 to vector<16x1xf32>
    %140 = arith.addf %138, %139 : vector<16x1xf32>
    %141 = math.rsqrt %140 : vector<16x1xf32>
    %142 = vector.broadcast %141 : vector<16x1xf32> to vector<16x32xf32>
    %143 = arith.mulf %133, %142 : vector<16x32xf32>
    %144 = vector.broadcast %99 : vector<1x32xf32> to vector<16x32xf32>
    %145 = arith.mulf %143, %144 : vector<16x32xf32>
    %146 = vector.broadcast %100 : vector<1x32xf32> to vector<16x32xf32>
    %147 = arith.addf %145, %146 : vector<16x32xf32>
    %c1_61 = arith.constant 1 : index
    %c0_62 = arith.constant 0 : index
    %c0_63 = arith.constant 0 : index
    %148 = vector.load %arg3[%c1_61, %c0_62, %c0_63] : memref<3x32x128xf32, #tpu.memory_space<vmem>>, vector<1x32x128xf32>
    %149 = vector.shape_cast %148 : vector<1x32x128xf32> to vector<32x128xf32>
    %cst_64 = arith.constant dense<0.000000e+00> : vector<16x128xf32>
    %150 = tpu.matmul %147, %149, %cst_64 {dimension_numbers = #tpu.dot_dimension_numbers<[1], [0], [0], [1], [0, 0, 1, 1], [], []>} : vector<16x32xf32>, vector<32x128xf32>, vector<16x128xf32> -> vector<16x128xf32>
    %151 = vector.broadcast %97 : vector<1x128xf32> to vector<16x128xf32>
    %152 = arith.addf %150, %151 : vector<16x128xf32>
    %cst_65 = arith.constant 0.000000e+00 : f32
    %153 = vector.broadcast %cst_65 : f32 to vector<16x128xf32>
    %154 = arith.maximumf %152, %153 : vector<16x128xf32>
    %c1_66 = arith.constant 1 : index
    %c0_67 = arith.constant 0 : index
    %c0_68 = arith.constant 0 : index
    %155 = vector.load %arg4[%c1_66, %c0_67, %c0_68] : memref<3x128x32xf32, #tpu.memory_space<vmem>>, vector<1x128x32xf32>
    %156 = vector.shape_cast %155 : vector<1x128x32xf32> to vector<128x32xf32>
    %cst_69 = arith.constant dense<0.000000e+00> : vector<16x32xf32>
    %157 = tpu.matmul %154, %156, %cst_69 {dimension_numbers = #tpu.dot_dimension_numbers<[1], [0], [0], [1], [0, 0, 1, 1], [], []>} : vector<16x128xf32>, vector<128x32xf32>, vector<16x32xf32> -> vector<16x32xf32>
    %158 = vector.broadcast %98 : vector<1x32xf32> to vector<16x32xf32>
    %159 = arith.addf %157, %158 : vector<16x32xf32>
    %160 = arith.addf %147, %159 : vector<16x32xf32>
    %cst_70 = arith.constant dense<0.000000e+00> : vector<16xf32>
    %161 = vector.multi_reduction <add>, %160, %cst_70 [1] : vector<16x32xf32> to vector<16xf32>
    %162 = vector.shape_cast %161 : vector<16xf32> to vector<16x1xf32>
    %cst_71 = arith.constant 3.200000e+01 : f32
    %163 = vector.broadcast %cst_71 : f32 to vector<16x1xf32>
    %164 = arith.divf %162, %163 : vector<16x1xf32>
    %165 = vector.broadcast %164 : vector<16x1xf32> to vector<16x32xf32>
    %166 = arith.subf %160, %165 : vector<16x32xf32>
    %167 = arith.mulf %166, %166 : vector<16x32xf32>
    %cst_72 = arith.constant dense<0.000000e+00> : vector<16xf32>
    %168 = vector.multi_reduction <add>, %167, %cst_72 [1] : vector<16x32xf32> to vector<16xf32>
    %169 = vector.shape_cast %168 : vector<16xf32> to vector<16x1xf32>
    %cst_73 = arith.constant 3.200000e+01 : f32
    %170 = vector.broadcast %cst_73 : f32 to vector<16x1xf32>
    %171 = arith.divf %169, %170 : vector<16x1xf32>
    %cst_74 = arith.constant 9.99999974E-6 : f32
    %172 = vector.broadcast %cst_74 : f32 to vector<16x1xf32>
    %173 = arith.addf %171, %172 : vector<16x1xf32>
    %174 = math.rsqrt %173 : vector<16x1xf32>
    %175 = vector.broadcast %174 : vector<16x1xf32> to vector<16x32xf32>
    %176 = arith.mulf %166, %175 : vector<16x32xf32>
    %177 = vector.broadcast %101 : vector<1x32xf32> to vector<16x32xf32>
    %178 = arith.mulf %176, %177 : vector<16x32xf32>
    %179 = vector.broadcast %102 : vector<1x32xf32> to vector<16x32xf32>
    %180 = arith.addf %178, %179 : vector<16x32xf32>
    %c2 = arith.constant 2 : index
    %c0_75 = arith.constant 0 : index
    %c0_76 = arith.constant 0 : index
    %181 = vector.load %arg1[%c2, %c0_75, %c0_76] : memref<3x32x32xf32, #tpu.memory_space<vmem>>, vector<1x32x32xf32>
    %182 = vector.shape_cast %181 : vector<1x32x32xf32> to vector<32x32xf32>
    %c2_77 = arith.constant 2 : index
    %c0_78 = arith.constant 0 : index
    %c0_79 = arith.constant 0 : index
    %183 = vector.load %arg2[%c2_77, %c0_78, %c0_79] : memref<3x32x32xf32, #tpu.memory_space<vmem>>, vector<1x32x32xf32>
    %184 = vector.shape_cast %183 : vector<1x32x32xf32> to vector<32x32xf32>
    %c2_80 = arith.constant 2 : index
    %c0_81 = arith.constant 0 : index
    %c0_82 = arith.constant 0 : index
    %185 = vector.load %arg5[%c2_80, %c0_81, %c0_82] : memref<3x8x128xf32, #tpu.memory_space<vmem>>, vector<1x8x128xf32>
    %186 = vector.shape_cast %185 : vector<1x8x128xf32> to vector<8x128xf32>
    %187 = vector.extract_strided_slice %186 {offsets = [0, 0], sizes = [1, 128], strides = [1, 1]} : vector<8x128xf32> to vector<1x128xf32>
    %188 = vector.extract_strided_slice %186 {offsets = [1, 0], sizes = [1, 32], strides = [1, 1]} : vector<8x128xf32> to vector<1x32xf32>
    %189 = vector.extract_strided_slice %186 {offsets = [2, 0], sizes = [1, 32], strides = [1, 1]} : vector<8x128xf32> to vector<1x32xf32>
    %190 = vector.extract_strided_slice %186 {offsets = [3, 0], sizes = [1, 32], strides = [1, 1]} : vector<8x128xf32> to vector<1x32xf32>
    %191 = vector.extract_strided_slice %186 {offsets = [4, 0], sizes = [1, 32], strides = [1, 1]} : vector<8x128xf32> to vector<1x32xf32>
    %192 = vector.extract_strided_slice %186 {offsets = [5, 0], sizes = [1, 32], strides = [1, 1]} : vector<8x128xf32> to vector<1x32xf32>
    %cst_83 = arith.constant dense<0.000000e+00> : vector<16x32xf32>
    %193 = tpu.matmul %180, %182, %cst_83 {dimension_numbers = #tpu.dot_dimension_numbers<[1], [0], [0], [1], [0, 0, 1, 1], [], []>} : vector<16x32xf32>, vector<32x32xf32>, vector<16x32xf32> -> vector<16x32xf32>
    %cst_84 = arith.constant 0.176776692 : f32
    %194 = vector.broadcast %cst_84 : f32 to vector<16x32xf32>
    %195 = arith.mulf %193, %194 : vector<16x32xf32>
    %cst_85 = arith.constant dense<0.000000e+00> : vector<32xf32>
    %196 = vector.multi_reduction <add>, %180, %cst_85 [0] : vector<16x32xf32> to vector<32xf32>
    %197 = vector.shape_cast %196 : vector<32xf32> to vector<1x32xf32>
    %cst_86 = arith.constant 9.99999993E-9 : f32
    %198 = vector.broadcast %cst_86 : f32 to vector<1x32xf32>
    %199 = arith.mulf %198, %197 : vector<1x32xf32>
    %cst_87 = arith.constant 0.000000e+00 : f32
    %200 = vector.broadcast %cst_87 : f32 to vector<16x32xf32>
    %cst_88 = arith.constant dense<0.000000e+00> : vector<16x16xf32>
    %201 = tpu.matmul %195, %180, %cst_88 {dimension_numbers = #tpu.dot_dimension_numbers<[1], [1], [0], [0], [0, 0, 1, 0], [], []>} : vector<16x32xf32>, vector<16x32xf32>, vector<16x16xf32> -> vector<16x16xf32>
    %cst_89 = arith.constant dense<0xFF800000> : vector<16xf32>
    %202 = vector.multi_reduction <maximumf>, %201, %cst_89 [1] : vector<16x16xf32> to vector<16xf32>
    %203 = vector.shape_cast %202 : vector<16xf32> to vector<16x1xf32>
    %204 = vector.broadcast %203 : vector<16x1xf32> to vector<16x16xf32>
    %205 = arith.subf %201, %204 : vector<16x16xf32>
    %206 = math.exp %205 : vector<16x16xf32>
    %cst_90 = arith.constant dense<0.000000e+00> : vector<16xf32>
    %207 = vector.multi_reduction <add>, %206, %cst_90 [1] : vector<16x16xf32> to vector<16xf32>
    %208 = vector.shape_cast %207 : vector<16xf32> to vector<16x1xf32>
    %cst_91 = arith.constant dense<0.000000e+00> : vector<16x32xf32>
    %209 = tpu.matmul %206, %180, %cst_91 {dimension_numbers = #tpu.dot_dimension_numbers<[1], [0], [0], [1], [0, 0, 1, 1], [], []>} : vector<16x16xf32>, vector<16x32xf32>, vector<16x32xf32> -> vector<16x32xf32>
    %210 = tpu.reciprocal %208 {approx = true} : vector<16x1xf32> -> vector<16x1xf32>
    %211 = vector.broadcast %210 : vector<16x1xf32> to vector<16x32xf32>
    %212 = arith.mulf %209, %211 : vector<16x32xf32>
    %213 = vector.broadcast %199 : vector<1x32xf32> to vector<16x32xf32>
    %214 = arith.addf %212, %213 : vector<16x32xf32>
    %cst_92 = arith.constant dense<0.000000e+00> : vector<16x32xf32>
    %215 = tpu.matmul %214, %184, %cst_92 {dimension_numbers = #tpu.dot_dimension_numbers<[1], [0], [0], [1], [0, 0, 1, 1], [], []>} : vector<16x32xf32>, vector<32x32xf32>, vector<16x32xf32> -> vector<16x32xf32>
    %216 = arith.addf %200, %215 : vector<16x32xf32>
    %217 = arith.addf %180, %216 : vector<16x32xf32>
    %cst_93 = arith.constant dense<0.000000e+00> : vector<16xf32>
    %218 = vector.multi_reduction <add>, %217, %cst_93 [1] : vector<16x32xf32> to vector<16xf32>
    %219 = vector.shape_cast %218 : vector<16xf32> to vector<16x1xf32>
    %cst_94 = arith.constant 3.200000e+01 : f32
    %220 = vector.broadcast %cst_94 : f32 to vector<16x1xf32>
    %221 = arith.divf %219, %220 : vector<16x1xf32>
    %222 = vector.broadcast %221 : vector<16x1xf32> to vector<16x32xf32>
    %223 = arith.subf %217, %222 : vector<16x32xf32>
    %224 = arith.mulf %223, %223 : vector<16x32xf32>
    %cst_95 = arith.constant dense<0.000000e+00> : vector<16xf32>
    %225 = vector.multi_reduction <add>, %224, %cst_95 [1] : vector<16x32xf32> to vector<16xf32>
    %226 = vector.shape_cast %225 : vector<16xf32> to vector<16x1xf32>
    %cst_96 = arith.constant 3.200000e+01 : f32
    %227 = vector.broadcast %cst_96 : f32 to vector<16x1xf32>
    %228 = arith.divf %226, %227 : vector<16x1xf32>
    %cst_97 = arith.constant 9.99999974E-6 : f32
    %229 = vector.broadcast %cst_97 : f32 to vector<16x1xf32>
    %230 = arith.addf %228, %229 : vector<16x1xf32>
    %231 = math.rsqrt %230 : vector<16x1xf32>
    %232 = vector.broadcast %231 : vector<16x1xf32> to vector<16x32xf32>
    %233 = arith.mulf %223, %232 : vector<16x32xf32>
    %234 = vector.broadcast %189 : vector<1x32xf32> to vector<16x32xf32>
    %235 = arith.mulf %233, %234 : vector<16x32xf32>
    %236 = vector.broadcast %190 : vector<1x32xf32> to vector<16x32xf32>
    %237 = arith.addf %235, %236 : vector<16x32xf32>
    %c2_98 = arith.constant 2 : index
    %c0_99 = arith.constant 0 : index
    %c0_100 = arith.constant 0 : index
    %238 = vector.load %arg3[%c2_98, %c0_99, %c0_100] : memref<3x32x128xf32, #tpu.memory_space<vmem>>, vector<1x32x128xf32>
    %239 = vector.shape_cast %238 : vector<1x32x128xf32> to vector<32x128xf32>
    %cst_101 = arith.constant dense<0.000000e+00> : vector<16x128xf32>
    %240 = tpu.matmul %237, %239, %cst_101 {dimension_numbers = #tpu.dot_dimension_numbers<[1], [0], [0], [1], [0, 0, 1, 1], [], []>} : vector<16x32xf32>, vector<32x128xf32>, vector<16x128xf32> -> vector<16x128xf32>
    %241 = vector.broadcast %187 : vector<1x128xf32> to vector<16x128xf32>
    %242 = arith.addf %240, %241 : vector<16x128xf32>
    %cst_102 = arith.constant 0.000000e+00 : f32
    %243 = vector.broadcast %cst_102 : f32 to vector<16x128xf32>
    %244 = arith.maximumf %242, %243 : vector<16x128xf32>
    %c2_103 = arith.constant 2 : index
    %c0_104 = arith.constant 0 : index
    %c0_105 = arith.constant 0 : index
    %245 = vector.load %arg4[%c2_103, %c0_104, %c0_105] : memref<3x128x32xf32, #tpu.memory_space<vmem>>, vector<1x128x32xf32>
    %246 = vector.shape_cast %245 : vector<1x128x32xf32> to vector<128x32xf32>
    %cst_106 = arith.constant dense<0.000000e+00> : vector<16x32xf32>
    %247 = tpu.matmul %244, %246, %cst_106 {dimension_numbers = #tpu.dot_dimension_numbers<[1], [0], [0], [1], [0, 0, 1, 1], [], []>} : vector<16x128xf32>, vector<128x32xf32>, vector<16x32xf32> -> vector<16x32xf32>
    %248 = vector.broadcast %188 : vector<1x32xf32> to vector<16x32xf32>
    %249 = arith.addf %247, %248 : vector<16x32xf32>
    %250 = arith.addf %237, %249 : vector<16x32xf32>
    %cst_107 = arith.constant dense<0.000000e+00> : vector<16xf32>
    %251 = vector.multi_reduction <add>, %250, %cst_107 [1] : vector<16x32xf32> to vector<16xf32>
    %252 = vector.shape_cast %251 : vector<16xf32> to vector<16x1xf32>
    %cst_108 = arith.constant 3.200000e+01 : f32
    %253 = vector.broadcast %cst_108 : f32 to vector<16x1xf32>
    %254 = arith.divf %252, %253 : vector<16x1xf32>
    %255 = vector.broadcast %254 : vector<16x1xf32> to vector<16x32xf32>
    %256 = arith.subf %250, %255 : vector<16x32xf32>
    %257 = arith.mulf %256, %256 : vector<16x32xf32>
    %cst_109 = arith.constant dense<0.000000e+00> : vector<16xf32>
    %258 = vector.multi_reduction <add>, %257, %cst_109 [1] : vector<16x32xf32> to vector<16xf32>
    %259 = vector.shape_cast %258 : vector<16xf32> to vector<16x1xf32>
    %cst_110 = arith.constant 3.200000e+01 : f32
    %260 = vector.broadcast %cst_110 : f32 to vector<16x1xf32>
    %261 = arith.divf %259, %260 : vector<16x1xf32>
    %cst_111 = arith.constant 9.99999974E-6 : f32
    %262 = vector.broadcast %cst_111 : f32 to vector<16x1xf32>
    %263 = arith.addf %261, %262 : vector<16x1xf32>
    %264 = math.rsqrt %263 : vector<16x1xf32>
    %265 = vector.broadcast %264 : vector<16x1xf32> to vector<16x32xf32>
    %266 = arith.mulf %256, %265 : vector<16x32xf32>
    %267 = vector.broadcast %191 : vector<1x32xf32> to vector<16x32xf32>
    %268 = arith.mulf %266, %267 : vector<16x32xf32>
    %269 = vector.broadcast %192 : vector<1x32xf32> to vector<16x32xf32>
    %270 = arith.addf %268, %269 : vector<16x32xf32>
    %c0_112 = arith.constant 0 : index
    %c0_113 = arith.constant 0 : index
    %271 = vector.load %arg6[%c0_112, %c0_113] : memref<1x32xf32, #tpu.memory_space<vmem>>, vector<1x32xf32>
    %cst_114 = arith.constant dense<0.000000e+00> : vector<1x16xf32>
    %272 = tpu.matmul %271, %270, %cst_114 {dimension_numbers = #tpu.dot_dimension_numbers<[1], [1], [0], [0], [0, 0, 1, 0], [], []>} : vector<1x32xf32>, vector<16x32xf32>, vector<1x16xf32> -> vector<1x16xf32>
    %c0_115 = arith.constant 0 : index
    %c0_116 = arith.constant 0 : index
    %273 = vector.load %arg7[%c0_115, %c0_116] : memref<1x16xf32, #tpu.memory_space<vmem>>, vector<1x16xf32>
    tpu.vector_store %arg7[%c0_115, %c0_116], %272 {strides = array<i32>} : memref<1x16xf32, #tpu.memory_space<vmem>>, vector<1x16xf32>,
    return
  }
}

</mosaic_0001>

<bundles_post_ra>
// kernel: tpu_custom_call.1
= control target key start
LH: loop header
LB: loop body
LE: loop exit
PB: predicated region body
PF: predicated region fallthrough
CT: control target
= control target key end

     0   :  { %vm38_vm0 = vcmask 261120   ;;  %s3353_s0 = inlined_call_operand.vmem [shape: f32[16,32], index: 0, kind: input, shape index: {}]   ;;  %s3354_s1 = inlined_call_operand.vmem [shape: f32[3,32,32], index: 1, kind: input, shape index: {}]   ;;  %s3355_s2 = inlined_call_operand.vmem [shape: f32[3,32,32], index: 2, kind: input, shape index: {}]   ;;  %s3356_s3 = inlined_call_operand.vmem [shape: f32[3,32,128], index: 3, kind: input, shape index: {}]   ;;  %s3357_s4 = inlined_call_operand.vmem [shape: f32[3,128,32], index: 4, kind: input, shape index: {}]   ;;  %s3358_s5 = inlined_call_operand.vmem [shape: f32[3,8,128], index: 5, kind: input, shape index: {}]   ;;  %s3359_s6 = inlined_call_operand.vmem [shape: f32[1,32], index: 6, kind: input, shape index: {}]   ;;  %s3360_s7 = inlined_call_operand.hbm [shape: f32[1,16], index: 7, kind: output, shape index: {}]  }
   0x1   :  { %v29_v0 = vld [vmem:[%s3354_s1] sm:$0xff]  ;;  %v30_v1 = vld [vmem:[%s3354_s1 + $0x8] sm:$0xff]  ;;  %v31_v2 = vld [vmem:[%s3354_s1 + $0x10] sm:$0xff] }
   0x2   :  { %v2528_v3 = vpack.c.bf16 %v30_v1, %v29_v0  ;;  %v32_v4 = vld [vmem:[%s3354_s1 + $0x18] sm:$0xff]  ;;  %v2865_v5 = vld [vmem:[%s3353_s0] sm:$0xff]  ;;  %v2870_v6 = vld [vmem:[%s3353_s0 + $0x8] sm:$0xff] }
   0x3   :  { %v2532_v7 = vpack.c.bf16 %v32_v4, %v31_v2  ;;  %2283 = vmatprep.mubr.msk.f32.mxu1 %vm38_vm0, %v2865_v5  ;;  %v2536_v8 = vpack.c.bf16 %v2870_v6, %v2865_v5 }
   0x4   :  { %2529 = vmatprep.subr.bf16.mxu1 %v2528_v3 }
   0x5   :  { %12 = vsyncpa [#allocation3], 0  ;;  %2531 = vmatpush3.bf16.msra.mxu1 %v2528_v3  ;;  %2543 = vmatprep.subr.bf16.mxu0 %v2536_v8  ;;  %vm213_vm2 = vcmask 130048   ;;  %v33_v28 = vld [vmem:[%s3355_s2] sm:$0xff]  ;;  %v34_v29 = vld [vmem:[%s3355_s2 + $0x8] sm:$0xff]  ;;  %v122_v34 = vsel %vm38_vm0, %v2865_v5, 0.0 }
   0x6   :  { %2533 = vmatprep.subr.bf16.mxu1 %v2532_v7  ;;  %2545 = vmatpush3.bf16.msra.mxu0 %v2536_v8  ;;  %vm2878_vm1 = vmpackc.low %vm38_vm0, %vm38_vm0  ;;  %v2546_v30 = vpack.c.bf16 %v34_v29, %v33_v28  ;;  %v35_v31 = vld [vmem:[%s3355_s2 + $0x10] sm:$0xff]  ;;  %v36_v32 = vld [vmem:[%s3355_s2 + $0x18] sm:$0xff]  ;;  %v123_v35 = vsel %vm38_vm0, %v2870_v6, 0.0  ;;  %vm2807_vm3 = vmmov 0   ;;  %vm2027_vm4 = vcmask 122880  }
   0x7   :  { %v2550_v33 = vpack.c.bf16 %v36_v32, %v35_v31  ;;  %v124_v36 = vadd.f32 %v123_v35, %v122_v34  ;;  %v542_v28 = vld [vmem:[%s3357_s4 + $0x50] sm:$0xff]  ;;  %v543_v29 = vld [vmem:[%s3357_s4 + $0x58] sm:$0xff]  ;;  %v544_v31 = vld [vmem:[%s3357_s4 + $0x60] sm:$0xff] }
   0x8   :  { %v545_v32 = vld [vmem:[%s3357_s4 + $0x68] sm:$0xff] }
   0x9   :  { %2535 = vmatpush3.bf16.msra.mxu1 %v2532_v7  ;;  %v125_v37 = vrot.slane %v124_v36, 4  ;;  %v442_v7 = vld [vmem:[%s3356_s3 + $0x8] sm:$0xff] }
   0xa   :  { %2538 = vmatprep.subr.msk.bf16.mxu1 %vm2878_vm1, %v2536_v8 }
   0xb   :  { %v126_v38 = vadd.f32 %v125_v37, %v124_v36 }
   0xc   :  { %2284 = vmatmul.mubr.msk.f32.vlgmr.msra.gmra.mrb[0].mxu1 %vm38_vm0, %v2870_v6 }
   0xd   :  { %v127_v40 = vrot.slane %v126_v38, 2 }
   0xf   :  { %v128_v42 = vadd.f32 %v127_v40, %v126_v38  ;;  %v429_v38 = vlaneseq }
  0x11   :  { %v129_v43 = vrot.slane %v128_v42, 1 }
  0x12   :  { %2541 = vmatpush3.bf16.xpose.msk.msra.mxu1 %vm2878_vm1, %v2536_v8 }
  0x13   :  { %2547 = vmatprep.subr.bf16.mxu1 %v2546_v30  ;;  %v130_v44 = vadd.f32 %v129_v43, %v128_v42  ;;  %v2990_v43 = vld [vmem:[%s3358_s5] sm:$0xff] }
  0x15   :  { %v131_v46 = vmul.f32 1e-08, %v130_v44 }
  0xdf   :  { %v2285_v10 = vpop.f32.mrb[0].mxu1 }
  0xe0   :  { %v111_v11 = vpop.f32.mrb[1].mxu1  ;;  %v121_v13 = vmul.f32 0.17677669, %v2285_v10  ;;  %v443_v10 = vld [vmem:[%s3356_s3 + $0x10] sm:$0xff] }
  0xe1   :  { %v120_v12 = vmul.f32 0.17677669, %v111_v11  ;;  %v444_v11 = vld [vmem:[%s3356_s3 + $0x18] sm:$0xff] }
  0xe3   :  { %2290 = vmatprep.mubr.msk.f32.mxu1 %vm38_vm0, %v120_v12  ;;  %v2558_v12 = vpack.c.bf16 %v444_v11, %v443_v10 }
  0xe4   :  { %2291 = vmatmul.mubr.msk.f32.vlgmr.msra.gmra.mrb[2].mxu1 %vm38_vm0, %v121_v13  ;;  %v532_v13 = vld [vmem:[%s3357_s4] sm:$0xff] }
  0xe5   :  { %2549 = vmatpush3.bf16.msra.mxu1 %v2546_v30  ;;  %v2582_v30 = vpack.c.bf16 %v543_v29, %v542_v28 }
  0xe6   :  { %2551 = vmatprep.subr.bf16.mxu1 %v2550_v33 }
  0xe9   :  { %2553 = vmatpush3.bf16.msra.mxu1 %v2550_v33  ;;  %v2586_v33 = vpack.c.bf16 %v545_v32, %v544_v31 }
 0x1b7   :  { %v2292_v14 = vpop.f32.mrb[2].mxu1 }
 0x1b8   :  { %v204_v15 = vpop.f32.mrb[3].mxu1  ;;  %v217_v17 = vsel %vm213_vm2, %v2292_v14, -inf }
 0x1b9   :  { %v214_v16 = vsel %vm213_vm2, %v204_v15, -inf }
 0x1ba   :  { %215 = vmax.xlane.f32.xlu0 %v214_v16 }
 0x1be   :  { %218 = vmax.xlane.f32.xlu0 %v217_v17  ;;  %v535_v17 = vld [vmem:[%s3357_s4 + $0x18] sm:$0xff] }
 0x247   :  { %v216_v18 = vpop.xlane.xlu0 %215 }
 0x248   :  { %v220_v19 = vsub.f32 %v204_v15, %v216_v18  ;;  %v534_v15 = vld [vmem:[%s3357_s4 + $0x10] sm:$0xff] }
 0x249   :  { %v2566_v18 = vpack.c.bf16 %v535_v17, %v534_v15 }
 0x24a   :  { %v222_v20 = vmul.f32 1.442695, %v220_v19  ;;  %v536_v19 = vld [vmem:[%s3357_s4 + $0x20] sm:$0xff] }
 0x24b   :  { %v219_v21 = vpop.xlane.xlu0 %218 }
 0x24c   :  { %2734 = vpow2.f32 %v222_v20  ;;  %v221_v22 = vsub.f32 %v2292_v14, %v219_v21  ;;  %v533_v14 = vld [vmem:[%s3357_s4 + $0x8] sm:$0xff] }
 0x24d   :  { %v2562_v16 = vpack.c.bf16 %v533_v14, %v532_v13  ;;  %v537_v20 = vld [vmem:[%s3357_s4 + $0x28] sm:$0xff] }
 0x24e   :  { %v224_v23 = vmul.f32 1.442695, %v221_v22  ;;  %v2570_v21 = vpack.c.bf16 %v537_v20, %v536_v19  ;;  %v538_v22 = vld [vmem:[%s3357_s4 + $0x30] sm:$0xff] }
 0x24f   :  { %2563 = vmatprep.subr.bf16.mxu1 %v2562_v16 }
 0x250   :  { %2736 = vpow2.f32 %v224_v23  ;;  %v539_v23 = vld [vmem:[%s3357_s4 + $0x38] sm:$0xff] }
 0x256   :  { %v2735_v24 = vpop.eup %2734 }
 0x257   :  { %2297 = vmatprep.mubr.msk.f32.mxu0 %vm213_vm2, %v2735_v24  ;;  %v226_v25 = vsel %vm213_vm2, %v2735_v24, 0.0  ;;  %v2574_v24 = vpack.c.bf16 %v539_v23, %v538_v22  ;;  %v2055_v23 = vld [vmem:[%s3354_s1 + $0x20] sm:$0xff] }
 0x258   :  { %227 = vadd.xlane.f32.xlu1 %v226_v25  ;;  %v540_v25 = vld [vmem:[%s3357_s4 + $0x40] sm:$0xff] }
 0x25a   :  { %v2737_v26 = vpop.eup %2736 }
 0x25b   :  { %2298 = vmatmul.mubr.msk.f32.vlgmr.msra.gmra.mrb[0].mxu0 %vm213_vm2, %v2737_v26  ;;  %v229_v27 = vsel %vm213_vm2, %v2737_v26, 0.0  ;;  %v541_v26 = vld [vmem:[%s3357_s4 + $0x48] sm:$0xff] }
 0x25c   :  { %230 = vadd.xlane.f32.xlu1 %v229_v27  ;;  %v2578_v27 = vpack.c.bf16 %v541_v26, %v540_v25  ;;  %v2057_v26 = vld [vmem:[%s3354_s1 + $0x30] sm:$0xff] }
 0x2e5   :  { %v228_v39 = vpop.xlane.xlu1 %227 }
 0x2e9   :  { %v231_v41 = vpop.xlane.xlu1 %230 }
 0x2ea   :  { %2738 = vrcp.f32 %v231_v41  ;;  %v2982_v41 = vshrl.u32 %v429_v38, 7 }
 0x2eb   :  { %2740 = vrcp.f32 %v228_v39 }
 0x2ec   :  { %v2985_v42 = vsub.s32 2, %v2982_v41  ;;  %v2993_v44 = vsub.s32 3, %v2982_v41 }
 0x2f4   :  { %v2739_v45 = vpop.eup %2738 }
 0x2f5   :  { %v2741_v48 = vpop.eup %2740 }
 0x32e   :  { %v2299_v47 = vpop.f32.mrb[0].mxu0 }
 0x32f   :  { %v316_v49 = vmul.f32 %v2739_v45, %v2299_v47  ;;  %v304_v50 = vpop.f32.mrb[1].mxu0  ;;  %v432_v45 = vrot.slane %v2990_v43, %v2985_v42 }
 0x330   :  { %v315_v51 = vmul.f32 %v2741_v48, %v304_v50  ;;  %v438_v50 = vrot.slane %v2990_v43, %v2993_v44 }
 0x331   :  { %v318_v53 = vadd.f32 %v316_v49, %v131_v46 }
 0x332   :  { %v317_v52 = vadd.f32 %v315_v51, %v131_v46 }
 0x334   :  { %2308 = vmatprep.mubr.msk.f32.mxu1 %vm38_vm0, %v317_v52 }
 0x335   :  { %2309 = vmatmul.mubr.msk.f32.vlgmr.msra.gmra.mrb[4].mxu1 %vm38_vm0, %v318_v53 }
 0x336   :  { %2565 = vmatpush3.bf16.msra.mxu1 %v2562_v16 }
 0x337   :  { %2567 = vmatprep.subr.bf16.mxu1 %v2566_v18 }
 0x33a   :  { %2569 = vmatpush3.bf16.msra.mxu1 %v2566_v18 }
 0x33b   :  { %2571 = vmatprep.subr.bf16.mxu1 %v2570_v21 }
 0x33e   :  { %2573 = vmatpush3.bf16.msra.mxu1 %v2570_v21 }
 0x33f   :  { %2575 = vmatprep.subr.bf16.mxu1 %v2574_v24 }
 0x342   :  { %2577 = vmatpush3.bf16.msra.mxu1 %v2574_v24  ;;  %v2056_v24 = vld [vmem:[%s3354_s1 + $0x28] sm:$0xff] }
 0x343   :  { %2579 = vmatprep.subr.bf16.mxu1 %v2578_v27  ;;  %v2594_v25 = vpack.c.bf16 %v2056_v24, %v2055_v23 }
 0x346   :  { %2581 = vmatpush3.bf16.msra.mxu1 %v2578_v27  ;;  %v2058_v27 = vld [vmem:[%s3354_s1 + $0x38] sm:$0xff] }
 0x347   :  { %2583 = vmatprep.subr.bf16.mxu1 %v2582_v30  ;;  %v2598_v28 = vpack.c.bf16 %v2058_v27, %v2057_v26 }
 0x34a   :  { %2585 = vmatpush3.bf16.msra.mxu1 %v2582_v30 }
 0x34b   :  { %2587 = vmatprep.subr.bf16.mxu1 %v2586_v33 }
 0x34e   :  { %2589 = vmatpush3.bf16.msra.mxu1 %v2586_v33 }
 0x408   :  { %v2310_v54 = vpop.f32.mrb[4].mxu1 }
 0x409   :  { %v401_v55 = vadd.f32 %v2310_v54, %v2870_v6  ;;  %v391_v56 = vpop.f32.mrb[5].mxu1  ;;  %v441_v6 = vld [vmem:[%s3356_s3] sm:$0xff] }
 0x40a   :  { %v400_v57 = vadd.f32 %v391_v56, %v2865_v5  ;;  %v2554_v8 = vpack.c.bf16 %v442_v7, %v441_v6  ;;  %v547_v56 = vld [vmem:[%s3357_s4 + $0x78] sm:$0xff] }
 0x40b   :  { %v405_v58 = vsel %vm38_vm0, %v401_v55, 0.0 }
 0x40c   :  { %406 = vadd.xlane.f32.xlu1 %v405_v58  ;;  %v402_v59 = vsel %vm38_vm0, %v400_v57, 0.0  ;;  %2555 = vmatprep.subr.bf16.mxu0 %v2554_v8  ;;  %v3010_v58 = vsub.s32 0, %v2982_v41 }
 0x40d   :  { %403 = vadd.xlane.f32.xlu0 %v402_v59  ;;  %2557 = vmatpush3.bf16.msra.mxu0 %v2554_v8 }
 0x40e   :  { %2559 = vmatprep.subr.bf16.mxu0 %v2558_v12  ;;  %v448_v59 = vrot.slane %v2990_v43, %v3010_v58 }
 0x411   :  { %2561 = vmatpush3.bf16.msra.mxu0 %v2558_v12 }
 0x412   :  { %2595 = vmatprep.subr.bf16.mxu0 %v2594_v25 }
 0x499   :  { %v407_v60 = vpop.xlane.xlu1 %406 }
 0x49a   :  { %v410_v61 = vmul.f32 0.03125, %v407_v60  ;;  %v404_v62 = vpop.xlane.xlu0 %403 }
 0x49b   :  { %v409_v63 = vmul.f32 0.03125, %v404_v62 }
 0x49c   :  { %v2918_v0 = vsub.f32 %v401_v55, %v410_v61  ;;  %v546_v55 = vld [vmem:[%s3357_s4 + $0x70] sm:$0xff] }
 0x49d   :  { %v2920_v1 = vsub.f32 %v400_v57, %v409_v63  ;;  %v2590_v57 = vpack.c.bf16 %v547_v56, %v546_v55 }
 0x49e   :  { %v414_v2 = vmul.f32 %v2918_v0, %v2918_v0 }
 0x49f   :  { %v413_v3 = vmul.f32 %v2920_v1, %v2920_v1  ;;  %2591 = vmatprep.subr.bf16.mxu1 %v2590_v57 }
 0x4a0   :  { %v418_v4 = vsel %vm38_vm0, %v414_v2, 0.0  ;;  %2593 = vmatpush3.bf16.msra.mxu1 %v2590_v57  ;;  %v3015_v2 = vsub.s32 1, %v2982_v41 }
 0x4a1   :  { %419 = vadd.xlane.f32.xlu1 %v418_v4  ;;  %v415_v5 = vsel %vm38_vm0, %v413_v3, 0.0 }
 0x4a2   :  { %416 = vadd.xlane.f32.xlu0 %v415_v5  ;;  %v551_v3 = vrot.slane %v2990_v43, %v3015_v2 }
 0x52e   :  { %v420_v34 = vpop.xlane.xlu1 %419 }
 0x52f   :  { %v422_v35 = vmul.f32 0.03125, %v420_v34  ;;  %v417_v36 = vpop.xlane.xlu0 %416 }
 0x530   :  { %v421_v37 = vmul.f32 0.03125, %v417_v36  ;;  %v3039_v36 = vsub.s32 5, %v2982_v41 }
 0x531   :  { %v424_v39 = vadd.f32 1e-05, %v422_v35  ;;  %v3036_v35 = vsub.s32 4, %v2982_v41 }
 0x532   :  { %v423_v40 = vadd.f32 1e-05, %v421_v37 }
 0x533   :  { %2742 = vrsqrt.f32 %v424_v39  ;;  %v658_v37 = vrot.slane %v2990_v43, %v3036_v35 }
 0x534   :  { %2744 = vrsqrt.f32 %v423_v40 }
 0x53d   :  { %v2743_v46 = vpop.eup %2742 }
 0x53e   :  { %v2745_v47 = vpop.eup %2744  ;;  %v428_v48 = vmul.f32 %v2743_v46, %v2918_v0 }
 0x53f   :  { %v427_v49 = vmul.f32 %v2745_v47, %v2920_v1 }
 0x540   :  { %v434_v51 = vmul.f32 %v432_v45, %v428_v48 }
 0x541   :  { %v433_v52 = vmul.f32 %v432_v45, %v427_v49  ;;  %v664_v45 = vrot.slane %v2990_v43, %v3039_v36 }
 0x542   :  { %v440_v54 = vadd.f32 %v438_v50, %v434_v51 }
 0x543   :  { %v439_v53 = vadd.f32 %v438_v50, %v433_v52 }
 0x545   :  { %2319 = vmatprep.mubr.msk.f32.mxu0 %vm38_vm0, %v439_v53 }
 0x546   :  { %2320 = vmatmul.mubr.msk.f32.vlgmr.msra.gmra.mrb[2].mxu0 %vm38_vm0, %v440_v54 }
 0x547   :  { %2597 = vmatpush3.bf16.msra.mxu0 %v2594_v25 }
 0x548   :  { %2599 = vmatprep.subr.bf16.mxu0 %v2598_v28 }
 0x54b   :  { %2601 = vmatpush3.bf16.msra.mxu0 %v2598_v28 }
 0x619   :  { %v2321_v60 = vpop.f32.mrb[2].mxu0 }
 0x61a   :  { %v527_v61 = vadd.f32 %v2321_v60, %v448_v59  ;;  %v521_v62 = vpop.f32.mrb[3].mxu0 }
 0x61b   :  { %v522_v63 = vadd.f32 %v521_v62, %v448_v59 }
 0x61c   :  { %v531_v1 = vmax.f32 %v527_v61, 0.0 }
 0x61d   :  { %v530_v0 = vmax.f32 %v522_v63, 0.0 }
 0x61f   :  { %2354 = vmatprep.mubr.f32.mxu1 %v530_v0 }
 0x620   :  { %2355 = vmatmul.mubr.f32.vlgmr.msra.gmra.mrb[6].mxu1 %v531_v1 }
 0x6f3   :  { %v2356_v4 = vpop.f32.mrb[6].mxu1 }
 0x6f4   :  { %v624_v5 = vadd.f32 %v2356_v4, %v551_v3  ;;  %v618_v6 = vpop.f32.mrb[7].mxu1 }
 0x6f5   :  { %v619_v7 = vadd.f32 %v618_v6, %v551_v3  ;;  %v2059_v6 = vld [vmem:[%s3355_s2 + $0x20] sm:$0xff] }
 0x6f6   :  { %v628_v8 = vadd.f32 %v624_v5, %v440_v54 }
 0x6f7   :  { %v627_v10 = vadd.f32 %v619_v7, %v439_v53  ;;  %v2060_v7 = vld [vmem:[%s3355_s2 + $0x28] sm:$0xff] }
 0x6f8   :  { %v632_v11 = vsel %vm38_vm0, %v628_v8, 0.0 }
 0x6f9   :  { %633 = vadd.xlane.f32.xlu1 %v632_v11  ;;  %v629_v12 = vsel %vm38_vm0, %v627_v10, 0.0  ;;  %v2062_v11 = vld [vmem:[%s3355_s2 + $0x38] sm:$0xff] }
 0x6fa   :  { %630 = vadd.xlane.f32.xlu0 %v629_v12 }
 0x786   :  { %v634_v13 = vpop.xlane.xlu1 %633 }
 0x787   :  { %v636_v14 = vmul.f32 0.03125, %v634_v13  ;;  %v631_v15 = vpop.xlane.xlu0 %630 }
 0x788   :  { %v635_v16 = vmul.f32 0.03125, %v631_v15 }
 0x789   :  { %v638_v17 = vsub.f32 %v628_v8, %v636_v14  ;;  %v2612_v8 = vpack.c.bf16 %v2060_v7, %v2059_v6  ;;  %v2086_v6 = vld [vmem:[%s3357_s4 + $0xb0] sm:$0xff]  ;;  %v2087_v7 = vld [vmem:[%s3357_s4 + $0xb8] sm:$0xff] }
 0x78a   :  { %v637_v18 = vsub.f32 %v627_v10, %v635_v16  ;;  %v2061_v10 = vld [vmem:[%s3355_s2 + $0x30] sm:$0xff] }
 0x78b   :  { %v640_v19 = vmul.f32 %v638_v17, %v638_v17  ;;  %v2616_v12 = vpack.c.bf16 %v2062_v11, %v2061_v10  ;;  %v2088_v10 = vld [vmem:[%s3357_s4 + $0xc0] sm:$0xff]  ;;  %v2089_v11 = vld [vmem:[%s3357_s4 + $0xc8] sm:$0xff] }
 0x78c   :  { %v639_v20 = vmul.f32 %v637_v18, %v637_v18 }
 0x78d   :  { %v644_v21 = vsel %vm38_vm0, %v640_v19, 0.0 }
 0x78e   :  { %645 = vadd.xlane.f32.xlu1 %v644_v21  ;;  %v641_v22 = vsel %vm38_vm0, %v639_v20, 0.0 }
 0x78f   :  { %642 = vadd.xlane.f32.xlu0 %v641_v22 }
 0x81b   :  { %v646_v29 = vpop.xlane.xlu1 %645 }
 0x81c   :  { %v648_v30 = vmul.f32 0.03125, %v646_v29  ;;  %v643_v31 = vpop.xlane.xlu0 %642 }
 0x81d   :  { %v647_v32 = vmul.f32 0.03125, %v643_v31 }
 0x81e   :  { %v650_v33 = vadd.f32 1e-05, %v648_v30 }
 0x81f   :  { %v649_v34 = vadd.f32 1e-05, %v647_v32 }
 0x820   :  { %2746 = vrsqrt.f32 %v650_v33 }
 0x821   :  { %2748 = vrsqrt.f32 %v649_v34 }
 0x82a   :  { %v2747_v38 = vpop.eup %2746 }
 0x82b   :  { %v2749_v39 = vpop.eup %2748  ;;  %v654_v40 = vmul.f32 %v2747_v38, %v638_v17 }
 0x82c   :  { %v653_v46 = vmul.f32 %v2749_v39, %v637_v18 }
 0x82d   :  { %v660_v47 = vmul.f32 %v658_v37, %v654_v40 }
 0x82e   :  { %v659_v48 = vmul.f32 %v658_v37, %v653_v46 }
 0x82f   :  { %v3045_v49 = vadd.f32 %v664_v45, %v660_v47 }
 0x830   :  { %v3047_v50 = vadd.f32 %v664_v45, %v659_v48 }
 0x831   :  { %v763_v14 = vsel %vm38_vm0, %v3045_v49, 0.0 }
 0x832   :  { %2365 = vmatprep.mubr.msk.f32.mxu0 %vm38_vm0, %v3047_v50  ;;  %v2602_v41 = vpack.c.bf16 %v3045_v49, %v3047_v50  ;;  %v762_v13 = vsel %vm38_vm0, %v3047_v50, 0.0 }
 0x833   :  { %2366 = vmatmul.mubr.msk.f32.vlgmr.msra.gmra.mrb[4].mxu0 %vm38_vm0, %v3045_v49  ;;  %v764_v15 = vadd.f32 %v763_v14, %v762_v13  ;;  %v2090_v13 = vld [vmem:[%s3357_s4 + $0xd0] sm:$0xff]  ;;  %v2091_v14 = vld [vmem:[%s3357_s4 + $0xd8] sm:$0xff] }
 0x834   :  { %2604 = vmatprep.subr.msk.bf16.mxu0 %vm2878_vm1, %v2602_v41 }
 0x835   :  { %2607 = vmatpush3.bf16.xpose.msk.msra.mxu0 %vm2878_vm1, %v2602_v41  ;;  %v765_v16 = vrot.slane %v764_v15, 4 }
 0x836   :  { %2609 = vmatprep.subr.bf16.mxu0 %v2602_v41 }
 0x837   :  { %v766_v17 = vadd.f32 %v765_v16, %v764_v15  ;;  %v2648_v15 = vpack.c.bf16 %v2091_v14, %v2090_v13  ;;  %v2092_v16 = vld [vmem:[%s3357_s4 + $0xe0] sm:$0xff] }
 0x839   :  { %v767_v18 = vrot.slane %v766_v17, 2 }
 0x83b   :  { %v768_v21 = vadd.f32 %v767_v18, %v766_v17  ;;  %v2093_v17 = vld [vmem:[%s3357_s4 + $0xe8] sm:$0xff] }
 0x83c   :  { %v2652_v18 = vpack.c.bf16 %v2093_v17, %v2092_v16 }
 0x83d   :  { %v769_v22 = vrot.slane %v768_v21, 1 }
 0x83f   :  { %v770_v23 = vadd.f32 %v769_v22, %v768_v21 }
 0x841   :  { %v771_v29 = vmul.f32 1e-08, %v770_v23 }
 0x906   :  { %v2367_v43 = vpop.f32.mrb[4].mxu0 }
 0x907   :  { %v751_v51 = vpop.f32.mrb[5].mxu0  ;;  %v761_v53 = vmul.f32 0.17677669, %v2367_v43 }
 0x908   :  { %v760_v52 = vmul.f32 0.17677669, %v751_v51 }
 0x90a   :  { %2372 = vmatprep.mubr.msk.f32.mxu0 %vm38_vm0, %v760_v52 }
 0x90b   :  { %2373 = vmatmul.mubr.msk.f32.vlgmr.msra.gmra.mrb[6].mxu0 %vm38_vm0, %v761_v53  ;;  %v2074_v53 = vld [vmem:[%s3356_s3 + $0x20] sm:$0xff] }
 0x90c   :  { %2611 = vmatpush3.bf16.msra.mxu0 %v2602_v41 }
 0x90d   :  { %2613 = vmatprep.subr.bf16.mxu0 %v2612_v8 }
 0x9de   :  { %v2374_v54 = vpop.f32.mrb[6].mxu0 }
 0x9df   :  { %v844_v55 = vpop.f32.mrb[7].mxu0  ;;  %v856_v56 = vsel %vm213_vm2, %v2374_v54, -inf }
 0x9e0   :  { %857 = vmax.xlane.f32.xlu1 %v856_v56  ;;  %v853_v57 = vsel %vm213_vm2, %v844_v55, -inf  ;;  %v2076_v56 = vld [vmem:[%s3356_s3 + $0x30] sm:$0xff] }
 0x9e1   :  { %854 = vmax.xlane.f32.xlu0 %v853_v57  ;;  %v2077_v57 = vld [vmem:[%s3356_s3 + $0x38] sm:$0xff] }
 0xa6d   :  { %v858_v59 = vpop.xlane.xlu1 %857 }
 0xa6e   :  { %v860_v60 = vsub.f32 %v2374_v54, %v858_v59  ;;  %v855_v61 = vpop.xlane.xlu0 %854  ;;  %v2075_v54 = vld [vmem:[%s3356_s3 + $0x28] sm:$0xff]  ;;  %v2624_v59 = vpack.c.bf16 %v2077_v57, %v2076_v56 }
 0xa6f   :  { %v859_v62 = vsub.f32 %v844_v55, %v855_v61  ;;  %v2620_v55 = vpack.c.bf16 %v2075_v54, %v2074_v53  ;;  %v2081_v61 = vld [vmem:[%s3357_s4 + $0x88] sm:$0xff] }
 0xa70   :  { %v863_v63 = vmul.f32 1.442695, %v860_v60  ;;  %v2080_v60 = vld [vmem:[%s3357_s4 + $0x80] sm:$0xff] }
 0xa71   :  { %v861_v0 = vmul.f32 1.442695, %v859_v62  ;;  %v2082_v62 = vld [vmem:[%s3357_s4 + $0x90] sm:$0xff] }
 0xa72   :  { %2750 = vpow2.f32 %v863_v63  ;;  %v2628_v63 = vpack.c.bf16 %v2081_v61, %v2080_v60 }
 0xa73   :  { %2752 = vpow2.f32 %v861_v0  ;;  %v2083_v0 = vld [vmem:[%s3357_s4 + $0x98] sm:$0xff] }
 0xa74   :  { %2629 = vmatprep.subr.bf16.mxu1 %v2628_v63 }
 0xa75   :  { %2631 = vmatpush3.bf16.msra.mxu1 %v2628_v63 }
 0xa7c   :  { %v2751_v1 = vpop.eup %2750 }
 0xa7d   :  { %v2753_v3 = vpop.eup %2752  ;;  %v868_v4 = vsel %vm213_vm2, %v2751_v1, 0.0 }
 0xa7e   :  { %869 = vadd.xlane.f32.xlu1 %v868_v4  ;;  %2379 = vmatprep.mubr.msk.f32.mxu0 %vm213_vm2, %v2753_v3  ;;  %v865_v5 = vsel %vm213_vm2, %v2753_v3, 0.0  ;;  %v2084_v3 = vld [vmem:[%s3357_s4 + $0xa0] sm:$0xff]  ;;  %v2085_v4 = vld [vmem:[%s3357_s4 + $0xa8] sm:$0xff] }
 0xa7f   :  { %2380 = vmatmul.mubr.msk.f32.vlgmr.msra.gmra.mrb[8].mxu0 %vm213_vm2, %v2751_v1  ;;  %866 = vadd.xlane.f32.xlu0 %v865_v5  ;;  %v2632_v1 = vpack.c.bf16 %v2083_v0, %v2082_v62  ;;  %v2636_v5 = vpack.c.bf16 %v2085_v4, %v2084_v3 }
 0xa80   :  { %2615 = vmatpush3.bf16.msra.mxu0 %v2612_v8  ;;  %v2640_v8 = vpack.c.bf16 %v2087_v7, %v2086_v6  ;;  %v2096_v7 = vld [vmem:[%s3354_s1 + $0x40] sm:$0xff] }
 0xa81   :  { %2617 = vmatprep.subr.bf16.mxu0 %v2616_v12  ;;  %2633 = vmatprep.subr.bf16.mxu1 %v2632_v1 }
 0xa82   :  { %2635 = vmatpush3.bf16.msra.mxu1 %v2632_v1 }
 0xa83   :  { %2637 = vmatprep.subr.bf16.mxu1 %v2636_v5 }
 0xa84   :  { %2619 = vmatpush3.bf16.msra.mxu0 %v2616_v12  ;;  %v2644_v12 = vpack.c.bf16 %v2089_v11, %v2088_v10  ;;  %v2098_v11 = vld [vmem:[%s3354_s1 + $0x50] sm:$0xff] }
 0xa85   :  { %2621 = vmatprep.subr.bf16.mxu0 %v2620_v55 }
 0xa86   :  { %2639 = vmatpush3.bf16.msra.mxu1 %v2636_v5 }
 0xa87   :  { %2641 = vmatprep.subr.bf16.mxu1 %v2640_v8 }
 0xa8a   :  { %2643 = vmatpush3.bf16.msra.mxu1 %v2640_v8  ;;  %v2097_v8 = vld [vmem:[%s3354_s1 + $0x48] sm:$0xff] }
 0xa8b   :  { %2645 = vmatprep.subr.bf16.mxu1 %v2644_v12  ;;  %v2660_v10 = vpack.c.bf16 %v2097_v8, %v2096_v7 }
 0xa8e   :  { %2647 = vmatpush3.bf16.msra.mxu1 %v2644_v12  ;;  %v2099_v12 = vld [vmem:[%s3354_s1 + $0x58] sm:$0xff] }
 0xa8f   :  { %2649 = vmatprep.subr.bf16.mxu1 %v2648_v15  ;;  %v2664_v13 = vpack.c.bf16 %v2099_v12, %v2098_v11 }
 0xa92   :  { %2651 = vmatpush3.bf16.msra.mxu1 %v2648_v15 }
 0xa93   :  { %2653 = vmatprep.subr.bf16.mxu1 %v2652_v18 }
 0xa96   :  { %2655 = vmatpush3.bf16.msra.mxu1 %v2652_v18 }
 0xb0b   :  { %v870_v19 = vpop.xlane.xlu1 %869 }
 0xb0c   :  { %v867_v20 = vpop.xlane.xlu0 %866  ;;  %2754 = vrcp.f32 %v870_v19 }
 0xb0d   :  { %2756 = vrcp.f32 %v867_v20 }
 0xb16   :  { %v2755_v24 = vpop.eup %2754 }
 0xb17   :  { %v2757_v26 = vpop.eup %2756 }
 0xb52   :  { %v2381_v25 = vpop.f32.mrb[8].mxu0 }
 0xb53   :  { %v955_v27 = vmul.f32 %v2755_v24, %v2381_v25  ;;  %v943_v28 = vpop.f32.mrb[9].mxu0  ;;  %v3156_v25 = vld [vmem:[%s3358_s5 + $0x8] sm:$0xff] }
 0xb54   :  { %v954_v30 = vmul.f32 %v2757_v26, %v943_v28  ;;  %v1070_v26 = vrot.slane %v3156_v25, %v2985_v42 }
 0xb55   :  { %v957_v32 = vadd.f32 %v955_v27, %v771_v29 }
 0xb56   :  { %v956_v31 = vadd.f32 %v954_v30, %v771_v29 }
 0xb58   :  { %2390 = vmatprep.mubr.msk.f32.mxu0 %vm38_vm0, %v956_v31  ;;  %v1076_v31 = vrot.slane %v3156_v25, %v2993_v44 }
 0xb59   :  { %2391 = vmatmul.mubr.msk.f32.vlgmr.msra.gmra.mrb[10].mxu0 %vm38_vm0, %v957_v32 }
 0xb5a   :  { %2623 = vmatpush3.bf16.msra.mxu0 %v2620_v55 }
 0xb5b   :  { %2625 = vmatprep.subr.bf16.mxu0 %v2624_v59 }
 0xb5e   :  { %2627 = vmatpush3.bf16.msra.mxu0 %v2624_v59 }
 0xb5f   :  { %2661 = vmatprep.subr.bf16.mxu0 %v2660_v10 }
 0xc2c   :  { %v2392_v33 = vpop.f32.mrb[10].mxu0 }
 0xc2d   :  { %v1040_v34 = vadd.f32 %v2392_v33, %v3045_v49  ;;  %v1030_v37 = vpop.f32.mrb[11].mxu0 }
 0xc2e   :  { %v1039_v38 = vadd.f32 %v1030_v37, %v3047_v50 }
 0xc2f   :  { %v1044_v39 = vsel %vm38_vm0, %v1040_v34, 0.0 }
 0xc30   :  { %1045 = vadd.xlane.f32.xlu1 %v1044_v39  ;;  %v1041_v40 = vsel %vm38_vm0, %v1039_v38, 0.0  ;;  %v2095_v39 = vld [vmem:[%s3357_s4 + $0xf8] sm:$0xff] }
 0xc31   :  { %1042 = vadd.xlane.f32.xlu0 %v1041_v40 }
 0xcbd   :  { %v1046_v45 = vpop.xlane.xlu1 %1045 }
 0xcbe   :  { %v1048_v46 = vmul.f32 0.03125, %v1046_v45  ;;  %v1043_v47 = vpop.xlane.xlu0 %1042  ;;  %v1087_v45 = vrot.slane %v3156_v25, %v3010_v58 }
 0xcbf   :  { %v1047_v48 = vmul.f32 0.03125, %v1043_v47 }
 0xcc0   :  { %v3089_v41 = vsub.f32 %v1040_v34, %v1048_v46 }
 0xcc1   :  { %v3091_v43 = vsub.f32 %v1039_v38, %v1047_v48  ;;  %v2094_v38 = vld [vmem:[%s3357_s4 + $0xf0] sm:$0xff] }
 0xcc2   :  { %v1052_v49 = vmul.f32 %v3089_v41, %v3089_v41  ;;  %v2656_v40 = vpack.c.bf16 %v2095_v39, %v2094_v38 }
 0xcc3   :  { %v1051_v50 = vmul.f32 %v3091_v43, %v3091_v43 }
 0xcc4   :  { %v1056_v51 = vsel %vm38_vm0, %v1052_v49, 0.0  ;;  %2657 = vmatprep.subr.bf16.mxu1 %v2656_v40 }
 0xcc5   :  { %1057 = vadd.xlane.f32.xlu1 %v1056_v51  ;;  %v1053_v52 = vsel %vm38_vm0, %v1051_v50, 0.0  ;;  %2659 = vmatpush3.bf16.msra.mxu1 %v2656_v40  ;;  %v1191_v50 = vrot.slane %v3156_v25, %v3015_v2 }
 0xcc6   :  { %1054 = vadd.xlane.f32.xlu0 %v1053_v52 }
 0xd52   :  { %v1058_v19 = vpop.xlane.xlu1 %1057 }
 0xd53   :  { %v1060_v20 = vmul.f32 0.03125, %v1058_v19  ;;  %v1055_v21 = vpop.xlane.xlu0 %1054 }
 0xd54   :  { %v1059_v22 = vmul.f32 0.03125, %v1055_v21 }
 0xd55   :  { %v1062_v23 = vadd.f32 1e-05, %v1060_v20  ;;  %v1298_v20 = vrot.slane %v3156_v25, %v3036_v35 }
 0xd56   :  { %v1061_v24 = vadd.f32 1e-05, %v1059_v22 }
 0xd57   :  { %2758 = vrsqrt.f32 %v1062_v23 }
 0xd58   :  { %2760 = vrsqrt.f32 %v1061_v24  ;;  %v1304_v24 = vrot.slane %v3156_v25, %v3039_v36 }
 0xd61   :  { %v2759_v27 = vpop.eup %2758 }
 0xd62   :  { %v2761_v28 = vpop.eup %2760  ;;  %v1066_v29 = vmul.f32 %v2759_v27, %v3089_v41 }
 0xd63   :  { %v1065_v30 = vmul.f32 %v2761_v28, %v3091_v43 }
 0xd64   :  { %v1072_v32 = vmul.f32 %v1070_v26, %v1066_v29 }
 0xd65   :  { %v1071_v33 = vmul.f32 %v1070_v26, %v1065_v30 }
 0xd66   :  { %v1078_v37 = vadd.f32 %v1076_v31, %v1072_v32 }
 0xd67   :  { %v1077_v34 = vadd.f32 %v1076_v31, %v1071_v33 }
 0xd69   :  { %2401 = vmatprep.mubr.msk.f32.mxu0 %vm38_vm0, %v1077_v34 }
 0xd6a   :  { %2402 = vmatmul.mubr.msk.f32.vlgmr.msra.gmra.mrb[12].mxu0 %vm38_vm0, %v1078_v37 }
 0xd6b   :  { %2663 = vmatpush3.bf16.msra.mxu0 %v2660_v10 }
 0xd6c   :  { %2665 = vmatprep.subr.bf16.mxu0 %v2664_v13 }
 0xd6f   :  { %2667 = vmatpush3.bf16.msra.mxu0 %v2664_v13 }
 0xe3d   :  { %v2403_v46 = vpop.f32.mrb[12].mxu0 }
 0xe3e   :  { %v1166_v47 = vadd.f32 %v2403_v46, %v1087_v45  ;;  %v1160_v48 = vpop.f32.mrb[13].mxu0 }
 0xe3f   :  { %v1161_v41 = vadd.f32 %v1160_v48, %v1087_v45 }
 0xe40   :  { %v1170_v49 = vmax.f32 %v1166_v47, 0.0 }
 0xe41   :  { %v1169_v43 = vmax.f32 %v1161_v41, 0.0 }
 0xe43   :  { %2436 = vmatprep.mubr.f32.mxu1 %v1169_v43 }
 0xe44   :  { %2437 = vmatmul.mubr.f32.vlgmr.msra.gmra.mrb[8].mxu1 %v1170_v49 }
 0xf17   :  { %v2438_v51 = vpop.f32.mrb[8].mxu1 }
 0xf18   :  { %v1264_v52 = vadd.f32 %v2438_v51, %v1191_v50  ;;  %v1258_v53 = vpop.f32.mrb[9].mxu1 }
 0xf19   :  { %v1259_v54 = vadd.f32 %v1258_v53, %v1191_v50  ;;  %v2100_v53 = vld [vmem:[%s3355_s2 + $0x40] sm:$0xff] }
 0xf1a   :  { %v1268_v55 = vadd.f32 %v1264_v52, %v1078_v37 }
 0xf1b   :  { %v1267_v56 = vadd.f32 %v1259_v54, %v1077_v34  ;;  %v2101_v54 = vld [vmem:[%s3355_s2 + $0x48] sm:$0xff] }
 0xf1c   :  { %v1272_v57 = vsel %vm38_vm0, %v1268_v55, 0.0 }
 0xf1d   :  { %1273 = vadd.xlane.f32.xlu1 %v1272_v57  ;;  %v1269_v59 = vsel %vm38_vm0, %v1267_v56, 0.0  ;;  %v2103_v57 = vld [vmem:[%s3355_s2 + $0x58] sm:$0xff] }
 0xf1e   :  { %1270 = vadd.xlane.f32.xlu0 %v1269_v59 }
 0xfaa   :  { %v1274_v60 = vpop.xlane.xlu1 %1273 }
 0xfab   :  { %v1276_v61 = vmul.f32 0.03125, %v1274_v60  ;;  %v1271_v62 = vpop.xlane.xlu0 %1270 }
 0xfac   :  { %v1275_v63 = vmul.f32 0.03125, %v1271_v62 }
 0xfad   :  { %v1278_v0 = vsub.f32 %v1268_v55, %v1276_v61  ;;  %v2678_v55 = vpack.c.bf16 %v2101_v54, %v2100_v53  ;;  %v2127_v53 = vld [vmem:[%s3357_s4 + $0x130] sm:$0xff]  ;;  %v2128_v54 = vld [vmem:[%s3357_s4 + $0x138] sm:$0xff] }
 0xfae   :  { %v1277_v1 = vsub.f32 %v1267_v56, %v1275_v63  ;;  %v2102_v56 = vld [vmem:[%s3355_s2 + $0x50] sm:$0xff] }
 0xfaf   :  { %v1280_v3 = vmul.f32 %v1278_v0, %v1278_v0  ;;  %v2682_v59 = vpack.c.bf16 %v2103_v57, %v2102_v56  ;;  %v2129_v56 = vld [vmem:[%s3357_s4 + $0x140] sm:$0xff]  ;;  %v2130_v57 = vld [vmem:[%s3357_s4 + $0x148] sm:$0xff] }
 0xfb0   :  { %v1279_v4 = vmul.f32 %v1277_v1, %v1277_v1 }
 0xfb1   :  { %v1284_v5 = vsel %vm38_vm0, %v1280_v3, 0.0 }
 0xfb2   :  { %1285 = vadd.xlane.f32.xlu1 %v1284_v5  ;;  %v1281_v6 = vsel %vm38_vm0, %v1279_v4, 0.0 }
 0xfb3   :  { %1282 = vadd.xlane.f32.xlu0 %v1281_v6 }
0x103f   :  { %v1286_v14 = vpop.xlane.xlu1 %1285 }
0x1040   :  { %v1288_v15 = vmul.f32 0.03125, %v1286_v14  ;;  %v1283_v16 = vpop.xlane.xlu0 %1282 }
0x1041   :  { %v1287_v17 = vmul.f32 0.03125, %v1283_v16 }
0x1042   :  { %v1290_v18 = vadd.f32 1e-05, %v1288_v15 }
0x1043   :  { %v1289_v19 = vadd.f32 1e-05, %v1287_v17 }
0x1044   :  { %2762 = vrsqrt.f32 %v1290_v18 }
0x1045   :  { %2764 = vrsqrt.f32 %v1289_v19 }
0x104e   :  { %v2763_v21 = vpop.eup %2762 }
0x104f   :  { %v2765_v22 = vpop.eup %2764  ;;  %v1294_v23 = vmul.f32 %v2763_v21, %v1278_v0 }
0x1050   :  { %v1293_v26 = vmul.f32 %v2765_v22, %v1277_v1 }
0x1051   :  { %v1300_v27 = vmul.f32 %v1298_v20, %v1294_v23 }
0x1052   :  { %v1299_v28 = vmul.f32 %v1298_v20, %v1293_v26 }
0x1053   :  { %v3196_v29 = vadd.f32 %v1304_v24, %v1300_v27 }
0x1054   :  { %v3198_v30 = vadd.f32 %v1304_v24, %v1299_v28 }
0x1055   :  { %v1403_v61 = vsel %vm38_vm0, %v3196_v29, 0.0 }
0x1056   :  { %2447 = vmatprep.mubr.msk.f32.mxu0 %vm38_vm0, %v3198_v30  ;;  %v2668_v31 = vpack.c.bf16 %v3196_v29, %v3198_v30  ;;  %v1402_v60 = vsel %vm38_vm0, %v3198_v30, 0.0 }
0x1057   :  { %2448 = vmatmul.mubr.msk.f32.vlgmr.msra.gmra.mrb[14].mxu0 %vm38_vm0, %v3196_v29  ;;  %v1404_v62 = vadd.f32 %v1403_v61, %v1402_v60  ;;  %v2131_v60 = vld [vmem:[%s3357_s4 + $0x150] sm:$0xff]  ;;  %v2132_v61 = vld [vmem:[%s3357_s4 + $0x158] sm:$0xff] }
0x1058   :  { %2670 = vmatprep.subr.msk.bf16.mxu0 %vm2878_vm1, %v2668_v31 }
0x1059   :  { %2673 = vmatpush3.bf16.xpose.msk.msra.mxu0 %vm2878_vm1, %v2668_v31  ;;  %v1405_v63 = vrot.slane %v1404_v62, 4 }
0x105a   :  { %2675 = vmatprep.subr.bf16.mxu0 %v2668_v31 }
0x105b   :  { %v1406_v0 = vadd.f32 %v1405_v63, %v1404_v62  ;;  %v2714_v62 = vpack.c.bf16 %v2132_v61, %v2131_v60  ;;  %v2133_v63 = vld [vmem:[%s3357_s4 + $0x160] sm:$0xff] }
0x105d   :  { %v1407_v1 = vrot.slane %v1406_v0, 2 }
0x105f   :  { %v1408_v5 = vadd.f32 %v1407_v1, %v1406_v0  ;;  %v2134_v0 = vld [vmem:[%s3357_s4 + $0x168] sm:$0xff] }
0x1060   :  { %v2718_v1 = vpack.c.bf16 %v2134_v0, %v2133_v63 }
0x1061   :  { %v1409_v6 = vrot.slane %v1408_v5, 1 }
0x1063   :  { %v1410_v7 = vadd.f32 %v1409_v6, %v1408_v5 }
0x1065   :  { %v1411_v14 = vmul.f32 1e-08, %v1410_v7 }
0x112a   :  { %v2449_v25 = vpop.f32.mrb[14].mxu0 }
0x112b   :  { %v1391_v32 = vpop.f32.mrb[15].mxu0  ;;  %v1401_v34 = vmul.f32 0.17677669, %v2449_v25 }
0x112c   :  { %v1400_v33 = vmul.f32 0.17677669, %v1391_v32 }
0x112e   :  { %2454 = vmatprep.mubr.msk.f32.mxu0 %vm38_vm0, %v1400_v33 }
0x112f   :  { %2455 = vmatmul.mubr.msk.f32.vlgmr.msra.gmra.mrb[16].mxu0 %vm38_vm0, %v1401_v34  ;;  %v2115_v34 = vld [vmem:[%s3356_s3 + $0x40] sm:$0xff] }
0x1130   :  { %2677 = vmatpush3.bf16.msra.mxu0 %v2668_v31 }
0x1131   :  { %2679 = vmatprep.subr.bf16.mxu0 %v2678_v55 }
0x1202   :  { %v2456_v37 = vpop.f32.mrb[16].mxu0 }
0x1203   :  { %v1484_v38 = vpop.f32.mrb[17].mxu0  ;;  %v1496_v39 = vsel %vm213_vm2, %v2456_v37, -inf }
0x1204   :  { %1497 = vmax.xlane.f32.xlu1 %v1496_v39  ;;  %v1493_v40 = vsel %vm213_vm2, %v1484_v38, -inf  ;;  %v2117_v39 = vld [vmem:[%s3356_s3 + $0x50] sm:$0xff] }
0x1205   :  { %1494 = vmax.xlane.f32.xlu0 %v1493_v40  ;;  %v2118_v40 = vld [vmem:[%s3356_s3 + $0x58] sm:$0xff] }
0x1291   :  { %v1498_v45 = vpop.xlane.xlu1 %1497 }
0x1292   :  { %v1500_v46 = vsub.f32 %v2456_v37, %v1498_v45  ;;  %v1495_v47 = vpop.xlane.xlu0 %1494  ;;  %v2116_v37 = vld [vmem:[%s3356_s3 + $0x48] sm:$0xff]  ;;  %v2690_v45 = vpack.c.bf16 %v2118_v40, %v2117_v39  ;;  %s2809_s3 = smov [#allocation2]  }
0x1293   :  { %v1499_v48 = vsub.f32 %v1484_v38, %v1495_v47  ;;  %v2686_v38 = vpack.c.bf16 %v2116_v37, %v2115_v34  ;;  %v2122_v47 = vld [vmem:[%s3357_s4 + $0x108] sm:$0xff]  ;;  %s2035_s29 = sshll.u32 %s2809_s3, 4  ;;  %s2036_s29 = int_to_ptr.vmem [resolvable:$true] %s2035_s29 }
0x1294   :  { %v1503_v41 = vmul.f32 1.442695, %v1500_v46  ;;  %v2121_v46 = vld [vmem:[%s3357_s4 + $0x100] sm:$0xff]  ;;  %s2782_s30 = scalar_lea.vmem %s2036_s29, 16  ;;  %s2786_s8 = scalar_lea.vmem %s2036_s29, 32 }
0x1295   :  { %v1501_v43 = vmul.f32 1.442695, %v1499_v48  ;;  %2687 = vmatprep.subr.bf16.mxu1 %v2686_v38  ;;  %v2123_v48 = vld [vmem:[%s3357_s4 + $0x110] sm:$0xff]  ;;  %p2783_p0 = scmp.ne.s32.totalorder %s2036_s29, %s2782_s30  ;;  %p2787_p1 = scmp.lt.s32.totalorder %s2036_s29, %s2036_s29 }
0x1296   :  { %2766 = vpow2.f32 %v1503_v41  ;;  %2689 = vmatpush3.bf16.msra.mxu1 %v2686_v38  ;;  %v2694_v41 = vpack.c.bf16 %v2122_v47, %v2121_v46  ;;  %p2788_p2 = scmp.lt.s32.totalorder %s2786_s8, %s2782_s30 }
0x1297   :  { %2768 = vpow2.f32 %v1501_v43  ;;  %2691 = vmatprep.subr.bf16.mxu1 %v2690_v45  ;;  %v2124_v43 = vld [vmem:[%s3357_s4 + $0x118] sm:$0xff] }
0x1298   :  { %p2789_p3 = por %p2788_p2, %p2787_p1 }
0x129a   :  { %2693 = vmatpush3.bf16.msra.mxu1 %v2690_v45  ;;  %p2790_p4 = pnand %p2789_p3, %p2783_p0 }
0x12a0   :  { %v2767_v49 = vpop.eup %2766 }
0x12a1   :  { %v2769_v50 = vpop.eup %2768  ;;  %v1508_v51 = vsel %vm213_vm2, %v2767_v49, 0.0 }
0x12a2   :  { %1509 = vadd.xlane.f32.xlu1 %v1508_v51  ;;  %2461 = vmatprep.mubr.msk.f32.mxu0 %vm213_vm2, %v2769_v50  ;;  %v1505_v52 = vsel %vm213_vm2, %v2769_v50, 0.0  ;;  %v2125_v50 = vld [vmem:[%s3357_s4 + $0x120] sm:$0xff]  ;;  %v2126_v51 = vld [vmem:[%s3357_s4 + $0x128] sm:$0xff] }
0x12a3   :  { %2462 = vmatmul.mubr.msk.f32.vlgmr.msra.gmra.mrb[18].mxu0 %vm213_vm2, %v2767_v49  ;;  %1506 = vadd.xlane.f32.xlu0 %v1505_v52  ;;  %v2698_v49 = vpack.c.bf16 %v2124_v43, %v2123_v48  ;;  %v2702_v52 = vpack.c.bf16 %v2126_v51, %v2125_v50  ;;  %v2806_v50 = vmov 0.0|0.0   ;;  %v2808_v51 = vmov 0.0  }
0x12a4   :  { %2681 = vmatpush3.bf16.msra.mxu0 %v2678_v55  ;;  %v2706_v55 = vpack.c.bf16 %v2128_v54, %v2127_v53  ;;  %2726 = vmatprep.subr.bf16.mxu1 %v2806_v50 }
0x12a5   :  { %2683 = vmatprep.subr.bf16.mxu0 %v2682_v59 }
0x12a8   :  { %2685 = vmatpush3.bf16.msra.mxu0 %v2682_v59  ;;  %v2710_v59 = vpack.c.bf16 %v2130_v57, %v2129_v56 }
0x12a9   :  { %2695 = vmatprep.subr.bf16.mxu0 %v2694_v41 }
0x132f   :  { %v1510_v3 = vpop.xlane.xlu1 %1509 }
0x1330   :  { %v1507_v4 = vpop.xlane.xlu0 %1506  ;;  %2770 = vrcp.f32 %v1510_v3 }
0x1331   :  { %2772 = vrcp.f32 %v1507_v4 }
0x133a   :  { %v2771_v8 = vpop.eup %2770 }
0x133b   :  { %v2773_v11 = vpop.eup %2772 }
0x1376   :  { %v2463_v10 = vpop.f32.mrb[18].mxu0 }
0x1377   :  { %v1595_v12 = vmul.f32 %v2771_v8, %v2463_v10  ;;  %v1583_v13 = vpop.f32.mrb[19].mxu0  ;;  %v3307_v10 = vld [vmem:[%s3358_s5 + $0x10] sm:$0xff] }
0x1378   :  { %v1594_v15 = vmul.f32 %v2773_v11, %v1583_v13  ;;  %v1710_v11 = vrot.slane %v3307_v10, %v2985_v42  ;;  %v2135_v42 = vld [vmem:[%s3357_s4 + $0x170] sm:$0xff]  ;;  %v1944_v63 = vrot.slane %v3307_v10, %v3039_v36 }
0x1379   :  { %v1597_v17 = vadd.f32 %v1595_v12, %v1411_v14 }
0x137a   :  { %v1596_v16 = vadd.f32 %v1594_v15, %v1411_v14 }
0x137c   :  { %2472 = vmatprep.mubr.msk.f32.mxu0 %vm38_vm0, %v1596_v16  ;;  %v1716_v16 = vrot.slane %v3307_v10, %v2993_v44  ;;  %v1727_v44 = vrot.slane %v3307_v10, %v3010_v58 }
0x137d   :  { %2473 = vmatmul.mubr.msk.f32.vlgmr.msra.gmra.mrb[20].mxu0 %vm38_vm0, %v1597_v17 }
0x137e   :  { %2697 = vmatpush3.bf16.msra.mxu0 %v2694_v41 }
0x137f   :  { %2699 = vmatprep.subr.bf16.mxu0 %v2698_v49 }
0x1382   :  { %2701 = vmatpush3.bf16.msra.mxu0 %v2698_v49 }
0x1383   :  { %2703 = vmatprep.subr.bf16.mxu0 %v2702_v52 }
0x1386   :  { %2705 = vmatpush3.bf16.msra.mxu0 %v2702_v52 }
0x1387   :  { %2707 = vmatprep.subr.bf16.mxu0 %v2706_v55 }
0x138a   :  { %2709 = vmatpush3.bf16.msra.mxu0 %v2706_v55 }
0x138b   :  { %2711 = vmatprep.subr.bf16.mxu0 %v2710_v59 }
0x138e   :  { %2713 = vmatpush3.bf16.msra.mxu0 %v2710_v59  ;;  %v1938_v59 = vrot.slane %v3307_v10, %v3036_v35 }
0x138f   :  { %2715 = vmatprep.subr.bf16.mxu0 %v2714_v62 }
0x1392   :  { %2717 = vmatpush3.bf16.msra.mxu0 %v2714_v62 }
0x1393   :  { %2719 = vmatprep.subr.bf16.mxu0 %v2718_v1 }
0x1396   :  { %2721 = vmatpush3.bf16.msra.mxu0 %v2718_v1 }
0x1450   :  { %v2474_v18 = vpop.f32.mrb[20].mxu0 }
0x1451   :  { %v1680_v19 = vadd.f32 %v2474_v18, %v3196_v29  ;;  %v1670_v20 = vpop.f32.mrb[21].mxu0 }
0x1452   :  { %v1679_v21 = vadd.f32 %v1670_v20, %v3198_v30 }
0x1453   :  { %v1684_v22 = vsel %vm38_vm0, %v1680_v19, 0.0 }
0x1454   :  { %1685 = vadd.xlane.f32.xlu1 %v1684_v22  ;;  %v1681_v23 = vsel %vm38_vm0, %v1679_v21, 0.0 }
0x1455   :  { %1682 = vadd.xlane.f32.xlu0 %v1681_v23 }
0x14e1   :  { %v1686_v24 = vpop.xlane.xlu1 %1685 }
0x14e2   :  { %v1688_v26 = vmul.f32 0.03125, %v1686_v24  ;;  %v1683_v27 = vpop.xlane.xlu0 %1682 }
0x14e3   :  { %v1687_v28 = vmul.f32 0.03125, %v1683_v27 }
0x14e4   :  { %v3240_v31 = vsub.f32 %v1680_v19, %v1688_v26 }
0x14e5   :  { %v3242_v25 = vsub.f32 %v1679_v21, %v1687_v28  ;;  %v2136_v21 = vld [vmem:[%s3357_s4 + $0x178] sm:$0xff] }
0x14e6   :  { %v1692_v29 = vmul.f32 %v3240_v31, %v3240_v31  ;;  %v2722_v22 = vpack.c.bf16 %v2136_v21, %v2135_v42 }
0x14e7   :  { %v1691_v30 = vmul.f32 %v3242_v25, %v3242_v25 }
0x14e8   :  { %v1696_v32 = vsel %vm38_vm0, %v1692_v29, 0.0  ;;  %2723 = vmatprep.subr.bf16.mxu0 %v2722_v22 }
0x14e9   :  { %1697 = vadd.xlane.f32.xlu1 %v1696_v32  ;;  %v1693_v33 = vsel %vm38_vm0, %v1691_v30, 0.0  ;;  %2725 = vmatpush3.bf16.msra.mxu0 %v2722_v22 }
0x14ea   :  { %1694 = vadd.xlane.f32.xlu0 %v1693_v33 }
0x1576   :  { %v1698_v3 = vpop.xlane.xlu1 %1697 }
0x1577   :  { %v1700_v4 = vmul.f32 0.03125, %v1698_v3  ;;  %v1695_v5 = vpop.xlane.xlu0 %1694 }
0x1578   :  { %v1699_v6 = vmul.f32 0.03125, %v1695_v5 }
0x1579   :  { %v1702_v7 = vadd.f32 1e-05, %v1700_v4 }
0x157a   :  { %v1701_v8 = vadd.f32 1e-05, %v1699_v6 }
0x157b   :  { %2774 = vrsqrt.f32 %v1702_v7  ;;  %v1947_v7 = vld [vmem:[%s3359_s6] sm:$0x1] }
0x157c   :  { %2776 = vrsqrt.f32 %v1701_v8 }
0x1585   :  { %v2775_v12 = vpop.eup %2774 }
0x1586   :  { %v2777_v13 = vpop.eup %2776  ;;  %v1706_v14 = vmul.f32 %v2775_v12, %v3240_v31 }
0x1587   :  { %v1705_v15 = vmul.f32 %v2777_v13, %v3242_v25  ;;  %v1831_v25 = vrot.slane %v3307_v10, %v3015_v2 }
0x1588   :  { %v1712_v17 = vmul.f32 %v1710_v11, %v1706_v14 }
0x1589   :  { %v1711_v18 = vmul.f32 %v1710_v11, %v1705_v15 }
0x158a   :  { %v1718_v20 = vadd.f32 %v1716_v16, %v1712_v17 }
0x158b   :  { %v1717_v19 = vadd.f32 %v1716_v16, %v1711_v18 }
0x158d   :  { %2483 = vmatprep.mubr.msk.f32.mxu1 %vm38_vm0, %v1717_v19 }
0x158e   :  { %2484 = vmatmul.mubr.msk.f32.vlgmr.msra.gmra.mrb[10].mxu1 %vm38_vm0, %v1718_v20 }
0x158f   :  { %2525 = vmatprep.mubr.msk.f32.mxu1 %vm2807_vm3, %v2808_v51 }
0x1661   :  { %v2485_v23 = vpop.f32.mrb[10].mxu1 }
0x1662   :  { %v1806_v24 = vadd.f32 %v2485_v23, %v1727_v44  ;;  %v1800_v26 = vpop.f32.mrb[11].mxu1 }
0x1663   :  { %v1801_v27 = vadd.f32 %v1800_v26, %v1727_v44 }
0x1664   :  { %v1810_v31 = vmax.f32 %v1806_v24, 0.0 }
0x1665   :  { %v1809_v28 = vmax.f32 %v1801_v27, 0.0 }
0x1667   :  { %2518 = vmatprep.mubr.f32.mxu0 %v1809_v28 }
0x1668   :  { %2519 = vmatmul.mubr.f32.vlgmr.msra.gmra.mrb[22].mxu0 %v1810_v31 }
0x173b   :  { %v2520_v29 = vpop.f32.mrb[22].mxu0 }
0x173c   :  { %v1904_v30 = vadd.f32 %v2520_v29, %v1831_v25  ;;  %v1898_v32 = vpop.f32.mrb[23].mxu0 }
0x173d   :  { %v1899_v33 = vadd.f32 %v1898_v32, %v1831_v25 }
0x173e   :  { %v1908_v34 = vadd.f32 %v1904_v30, %v1718_v20 }
0x173f   :  { %v1907_v37 = vadd.f32 %v1899_v33, %v1717_v19 }
0x1740   :  { %v1912_v38 = vsel %vm38_vm0, %v1908_v34, 0.0 }
0x1741   :  { %1913 = vadd.xlane.f32.xlu1 %v1912_v38  ;;  %v1909_v58 = vsel %vm38_vm0, %v1907_v37, 0.0 }
0x1742   :  { %1910 = vadd.xlane.f32.xlu0 %v1909_v58 }
0x17ce   :  { %v1914_v39 = vpop.xlane.xlu1 %1913 }
0x17cf   :  { %v1916_v40 = vmul.f32 0.03125, %v1914_v39  ;;  %v1911_v45 = vpop.xlane.xlu0 %1910 }
0x17d0   :  { %v1915_v46 = vmul.f32 0.03125, %v1911_v45 }
0x17d1   :  { %v1918_v47 = vsub.f32 %v1908_v34, %v1916_v40 }
0x17d2   :  { %v1917_v48 = vsub.f32 %v1907_v37, %v1915_v46 }
0x17d3   :  { %v1920_v41 = vmul.f32 %v1918_v47, %v1918_v47 }
0x17d4   :  { %v1919_v2 = vmul.f32 %v1917_v48, %v1917_v48 }
0x17d5   :  { %v1924_v43 = vsel %vm38_vm0, %v1920_v41, 0.0 }
0x17d6   :  { %1925 = vadd.xlane.f32.xlu1 %v1924_v43  ;;  %v1921_v49 = vsel %vm38_vm0, %v1919_v2, 0.0 }
0x17d7   :  { %1922 = vadd.xlane.f32.xlu0 %v1921_v49 }
0x1863   :  { %v1926_v52 = vpop.xlane.xlu1 %1925 }
0x1864   :  { %v1928_v53 = vmul.f32 0.03125, %v1926_v52  ;;  %v1923_v54 = vpop.xlane.xlu0 %1922 }
0x1865   :  { %v1927_v55 = vmul.f32 0.03125, %v1923_v54 }
0x1866   :  { %v1930_v56 = vadd.f32 1e-05, %v1928_v53 }
0x1867   :  { %v1929_v57 = vadd.f32 1e-05, %v1927_v55 }
0x1868   :  { %2778 = vrsqrt.f32 %v1930_v56 }
0x1869   :  { %2780 = vrsqrt.f32 %v1929_v57 }
0x1872   :  { %v2779_v60 = vpop.eup %2778 }
0x1873   :  { %v2781_v61 = vpop.eup %2780  ;;  %v1934_v62 = vmul.f32 %v2779_v60, %v1918_v47 }
0x1874   :  { %v1933_v0 = vmul.f32 %v2781_v61, %v1917_v48 }
0x1875   :  { %v1940_v1 = vmul.f32 %v1938_v59, %v1934_v62 }
0x1876   :  { %v1939_v3 = vmul.f32 %v1938_v59, %v1933_v0 }
0x1877   :  { %v1946_v4 = vadd.f32 %v1944_v63, %v1940_v1 }
0x1878   :  { %v1945_v5 = vadd.f32 %v1944_v63, %v1939_v3 }
0x187a   :  { %v2727_v6 = vpack.c.bf16 %v1946_v4, %v1945_v5 }
0x187c   :  { %2729 = vmatpush3.bf16.xpose.msk.msra.mxu1 %vm2878_vm1, %v2727_v6 }
0x1883   :  { %2526 = vmatmul.mubr.msk.f32.vlgmr.msra.gmra.mrb[12].mxu1 %vm38_vm0, %v1947_v7 }
0x1956   :  { %v2023_v35 = vpop.f32.mrb[12].mxu1 }
0x1957   :  { %2028 = vst.msk [vmem:[#allocation2] sm:$0x1] %vm2027_vm4, %v2023_v35  ;;  %v2527_v36 = vpop.f32.mrb[13].mxu1 }
0x1958   :  { %2793 = shalt.err (!%p2790_p4)
}
0x1959   :  { %s2794_s6 = scalar_lea.hbm %s3360_s7, 16 }
0x195a   :  { %p2795_p5 = scmp.ne.s32.totalorder %s3360_s7, %s2794_s6  ;;  %p2798_p6 = scmp.lt.u32.totalorder %s2794_s6, %s3360_s7 }
0x195c   :  { %p2800_p7 = pnand %p2798_p6, %p2795_p5 }
0x195e   :  { %2803 = shalt.err (!%p2800_p7)
}
0x195f   :  { %2038 = dma.vmem_to_hbm [thread:$0]  %s2036_s29, 16, %s3360_s7, [#allocation3]  }
0x1960   :  { %2804 = dma.done.wait [#allocation3], 16  }
0x1961   :  { %2805 = vsyncadd [#allocation3], 4294967280 }
0x1962   :  { %2042 = vsyncpa [#allocation3], 1 }

</bundles_post_ra>
